<compile_context>
chip_gen: v7x
topology: tpu7x:2x2x1
jax: 0.10.0
libtpu: 0.0.40
codegen_flags: <defaults>
</compile_context>

<pallas_src>
import jax
import jax.numpy as jnp
from jax.experimental import pallas as pl
from jax.experimental.pallas import tpu as pltpu


# ------------------------------- Pallas kernel -------------------------------
def _fused_forward_kernel(
    p1_ref, w1_ref, b1_ref, w2_ref, b2_ref, w3_ref, b3_ref,
    f1w_ref, f1b_ref, f2w_ref, f2b_ref,          # inputs
    out_ref,                                     # output [N, 10]
    a1_ref, p2_ref, a2_ref, h3_ref,              # VMEM scratch
):
    n = out_ref.shape[0]  # batch size (static)

    # conv1 + ReLU: pre-gathered 3x3 patches [49*N, 9] @ [9, 32]
    a1_ref[...] = jnp.maximum(
        jnp.dot(p1_ref[...], w1_ref[...], preferred_element_type=jnp.float32)
        + b1_ref[...], 0.0)

    # conv2 + ReLU: in-kernel im2col of the 7x7x32 map (3x3 taps, stride 2).
    # a1 rows are ordered (spatial s1 = ho*7 + wo major, batch minor).
    for ho in range(3):
        for wo in range(3):
            p_idx = ho * 3 + wo
            for t in range(9):
                i, j = divmod(t, 3)
                s1 = (2 * ho + i) * 7 + (2 * wo + j)
                p2_ref[pl.ds(p_idx * n, n), pl.ds(t * 32, 32)] = (
                    a1_ref[pl.ds(s1 * n, n), :])
    a2_ref[...] = jnp.maximum(
        jnp.dot(p2_ref[...], w2_ref[...], preferred_element_type=jnp.float32)
        + b2_ref[...], 0.0)

    # conv3 + ReLU: 3x3 input -> 1x1 output, so its single patch is the whole
    # 3x3x64 map laid out (position-major, channel-minor) per sample.
    for p_idx in range(9):
        h3_ref[:, pl.ds(p_idx * 64, 64)] = a2_ref[pl.ds(p_idx * n, n), :]
    a3 = jnp.maximum(
        jnp.dot(h3_ref[...], w3_ref[...], preferred_element_type=jnp.float32)
        + b3_ref[...], 0.0)                                          # [N, 128]

    # fc1 + tanh and fc2, fully fused (fc1 output never leaves vregs).
    h4 = jnp.tanh(
        jnp.dot(a3, f1w_ref[...], preferred_element_type=jnp.float32)
        + f1b_ref[...])                                              # [N, 64]
    out_ref[...] = (
        jnp.dot(h4, f2w_ref[...], preferred_element_type=jnp.float32)
        + f2b_ref[...])                                              # [N, 10]


# ------------------------------ param preparation -----------------------------
def init_params(key):
    ks = jax.random.split(key, 10)
    scale = 0.1
    return {
        "c1_w": scale * jax.random.normal(ks[0], (32, 1, 3, 3), jnp.float32),
        "c1_b": scale * jax.random.normal(ks[1], (32,), jnp.float32),
        "c2_w": scale * jax.random.normal(ks[2], (64, 32, 3, 3), jnp.float32),
        "c2_b": scale * jax.random.normal(ks[3], (64,), jnp.float32),
        "c3_w": scale * jax.random.normal(ks[4], (128, 64, 3, 3), jnp.float32),
        "c3_b": scale * jax.random.normal(ks[5], (128,), jnp.float32),
        "fc1_w": scale * jax.random.normal(ks[6], (64, 128), jnp.float32),  # [out,in]
        "fc1_b": scale * jax.random.normal(ks[7], (64,), jnp.float32),
        "fc2_w": scale * jax.random.normal(ks[8], (10, 64), jnp.float32),
        "fc2_b": scale * jax.random.normal(ks[9], (10,), jnp.float32),
    }


def prepare_params(params):
    """One-time layout prep: matmul-ready weights, [1,C] biases (hoisted)."""
    def conv_mat(w):  # [O, I, kH, kW] -> [kH*kW*I, O]  (cross-correlation order)
        o, i, kh, kw = w.shape
        return jnp.transpose(w, (2, 3, 1, 0)).reshape(kh * kw * i, o)

    return {
        "w1": conv_mat(params["c1_w"]), "b1": params["c1_b"].reshape(1, -1),
        "w2": conv_mat(params["c2_w"]), "b2": params["c2_b"].reshape(1, -1),
        "w3": conv_mat(params["c3_w"]), "b3": params["c3_b"].reshape(1, -1),
        "f1w": params["fc1_w"].T, "f1b": params["fc1_b"].reshape(1, -1),
        "f2w": params["fc2_w"].T, "f2b": params["fc2_b"].reshape(1, -1),
    }


# --------------------------------- forward -----------------------------------
def _conv1_patches(x_nchw):
    """[N,1,16,16] -> [49*N, 9] patches; rows (spatial-major, batch-minor),
    columns ordered (i*3+j) to match the [kH,kW,I,O] weight flatten."""
    n = x_nchw.shape[0]
    xs = x_nchw[:, 0]                                     # [N, 16, 16]
    taps = [xs[:, i:i + 13:2, j:j + 13:2]                 # each [N, 7, 7]
            for i in range(3) for j in range(3)]
    p = jnp.stack(taps, axis=-1)                          # [N, 7, 7, 9]
    return p.reshape(n, 49, 9).transpose(1, 0, 2).reshape(49 * n, 9)


def locally_connected_nn_forward(prep, x_nchw):
    n = x_nchw.shape[0]
    patches1 = _conv1_patches(x_nchw)
    operands = (patches1,
                prep["w1"], prep["b1"], prep["w2"], prep["b2"],
                prep["w3"], prep["b3"],
                prep["f1w"], prep["f1b"], prep["f2w"], prep["f2b"])

    flops = 2 * n * (49 * 9 * 32 + 9 * 288 * 64 + 576 * 128 + 128 * 64 + 64 * 10)
    bytes_accessed = sum(int(o.size) * o.dtype.itemsize for o in operands) + n * 10 * 4

    return pl.pallas_call(
        _fused_forward_kernel,
        out_shape=jax.ShapeDtypeStruct((n, 10), jnp.float32),
        in_specs=[pl.BlockSpec(memory_space=pltpu.MemorySpace.VMEM)] * len(operands),
        out_specs=pl.BlockSpec(memory_space=pltpu.MemorySpace.VMEM),
        scratch_shapes=[
            pltpu.VMEM((49 * n, 32), jnp.float32),   # conv1 output (7x7x32)
            pltpu.VMEM((9 * n, 288), jnp.float32),   # conv2 im2col patches
            pltpu.VMEM((9 * n, 64), jnp.float32),    # conv2 output (3x3x64)
            pltpu.VMEM((n, 576), jnp.float32),       # conv3 input (flattened)
        ],
        cost_estimate=pl.CostEstimate(
            flops=flops, transcendentals=n * 64, bytes_accessed=bytes_accessed),
    )(*operands)


# ------------------------- pure-JAX reference (check) -------------------------
def reference_forward(params, x):
    dn = ("NCHW", "OIHW", "NCHW")

    def conv_relu(h, w, b):
        y = jax.lax.conv_general_dilated(
            h, w, window_strides=(2, 2), padding="VALID",
            dimension_numbers=dn, precision=jax.lax.Precision.HIGHEST)
        return jax.nn.relu(y + b.reshape(1, -1, 1, 1))

    h = conv_relu(x, params["c1_w"], params["c1_b"])
    h = conv_relu(h, params["c2_w"], params["c2_b"])
    h = conv_relu(h, params["c3_w"], params["c3_b"])
    h = h.reshape(h.shape[0], -1)
    h = jnp.tanh(h @ params["fc1_w"].T + params["fc1_b"])
    return h @ params["fc2_w"].T + params["fc2_b"]


if __name__ == "__main__":
    key = jax.random.PRNGKey(0)
    pkey, xkey = jax.random.split(key)
    params = init_params(pkey)
    prep = prepare_params(params)   # one-time layout prep (hoisted out of forward)
    # Input: batch=2, 1 channel, 16x16 spatial (three stride-2 3x3 convs -> 1x1)
    x = jax.random.normal(xkey, (2, 1, 16, 16), jnp.float32)

    fwd = jax.jit(locally_connected_nn_forward)
    out = jax.block_until_ready(fwd(prep, x))
    assert out.shape == (2, 10) and out.dtype == jnp.float32

    ref = jax.block_until_ready(reference_forward(params, x))
    assert jnp.allclose(out, ref, rtol=5e-2, atol=1e-2), (out, ref)
    print("KERNEL_OK")
</pallas_src>

<mosaic_0001>
module attributes {stable_mosaic.version = 11 : i64} {
  func.func @_fused_forward_kernel(%arg0: memref<98x9xf32, #tpu.memory_space<vmem>>, %arg1: memref<9x32xf32, #tpu.memory_space<vmem>>, %arg2: memref<1x32xf32, #tpu.memory_space<vmem>>, %arg3: memref<288x64xf32, #tpu.memory_space<vmem>>, %arg4: memref<1x64xf32, #tpu.memory_space<vmem>>, %arg5: memref<576x128xf32, #tpu.memory_space<vmem>>, %arg6: memref<1x128xf32, #tpu.memory_space<vmem>>, %arg7: memref<128x64xf32, #tpu.memory_space<vmem>>, %arg8: memref<1x64xf32, #tpu.memory_space<vmem>>, %arg9: memref<64x10xf32, #tpu.memory_space<vmem>>, %arg10: memref<1x10xf32, #tpu.memory_space<vmem>>, %arg11: memref<2x10xf32, #tpu.memory_space<vmem>>, %arg12: memref<98x32xf32, #tpu.memory_space<vmem>>, %arg13: memref<18x288xf32, #tpu.memory_space<vmem>>, %arg14: memref<18x64xf32, #tpu.memory_space<vmem>>, %arg15: memref<2x576xf32, #tpu.memory_space<vmem>>) attributes {dimension_semantics = [], scalar_prefetch = 0 : i64, scratch_operands = 4 : i64, tpu.core_type = #tpu.core_type<tc>} {
    %c0 = arith.constant 0 : index
    %c0_0 = arith.constant 0 : index
    %0 = vector.load %arg0[%c0, %c0_0] : memref<98x9xf32, #tpu.memory_space<vmem>>, vector<98x9xf32>
    %c0_1 = arith.constant 0 : index
    %c0_2 = arith.constant 0 : index
    %1 = vector.load %arg1[%c0_1, %c0_2] : memref<9x32xf32, #tpu.memory_space<vmem>>, vector<9x32xf32>
    %cst = arith.constant dense<0.000000e+00> : vector<98x32xf32>
    %2 = tpu.matmul %0, %1, %cst {dimension_numbers = #tpu.dot_dimension_numbers<[1], [0], [0], [1], [0, 0, 1, 1], [], []>} : vector<98x9xf32>, vector<9x32xf32>, vector<98x32xf32> -> vector<98x32xf32>
    %c0_3 = arith.constant 0 : index
    %c0_4 = arith.constant 0 : index
    %3 = vector.load %arg2[%c0_3, %c0_4] : memref<1x32xf32, #tpu.memory_space<vmem>>, vector<1x32xf32>
    %4 = vector.broadcast %3 : vector<1x32xf32> to vector<98x32xf32>
    %5 = arith.addf %2, %4 : vector<98x32xf32>
    %cst_5 = arith.constant 0.000000e+00 : f32
    %6 = vector.broadcast %cst_5 : f32 to vector<98x32xf32>
    %7 = arith.maximumf %5, %6 : vector<98x32xf32>
    %c0_6 = arith.constant 0 : index
    %c0_7 = arith.constant 0 : index
    %8 = vector.load %arg12[%c0_6, %c0_7] : memref<98x32xf32, #tpu.memory_space<vmem>>, vector<98x32xf32>
    tpu.vector_store %arg12[%c0_6, %c0_7], %7 {strides = array<i32>} : memref<98x32xf32, #tpu.memory_space<vmem>>, vector<98x32xf32>,
    %c0_8 = arith.constant 0 : index
    %c0_9 = arith.constant 0 : index
    %9 = vector.load %arg12[%c0_8, %c0_9] : memref<98x32xf32, #tpu.memory_space<vmem>>, vector<2x32xf32>
    %c0_10 = arith.constant 0 : index
    %c0_11 = arith.constant 0 : index
    %10 = vector.load %arg13[%c0_10, %c0_11] : memref<18x288xf32, #tpu.memory_space<vmem>>, vector<2x32xf32>
    tpu.vector_store %arg13[%c0_10, %c0_11], %9 {strides = array<i32>} : memref<18x288xf32, #tpu.memory_space<vmem>>, vector<2x32xf32>,
    %c2 = arith.constant 2 : index
    %c0_12 = arith.constant 0 : index
    %11 = vector.load %arg12[%c2, %c0_12] : memref<98x32xf32, #tpu.memory_space<vmem>>, vector<2x32xf32>
    %c0_13 = arith.constant 0 : index
    %c32 = arith.constant 32 : index
    %12 = vector.load %arg13[%c0_13, %c32] : memref<18x288xf32, #tpu.memory_space<vmem>>, vector<2x32xf32>
    tpu.vector_store %arg13[%c0_13, %c32], %11 {strides = array<i32>} : memref<18x288xf32, #tpu.memory_space<vmem>>, vector<2x32xf32>,
    %c4 = arith.constant 4 : index
    %c0_14 = arith.constant 0 : index
    %13 = vector.load %arg12[%c4, %c0_14] : memref<98x32xf32, #tpu.memory_space<vmem>>, vector<2x32xf32>
    %c0_15 = arith.constant 0 : index
    %c64 = arith.constant 64 : index
    %14 = vector.load %arg13[%c0_15, %c64] : memref<18x288xf32, #tpu.memory_space<vmem>>, vector<2x32xf32>
    tpu.vector_store %arg13[%c0_15, %c64], %13 {strides = array<i32>} : memref<18x288xf32, #tpu.memory_space<vmem>>, vector<2x32xf32>,
    %c14 = arith.constant 14 : index
    %c0_16 = arith.constant 0 : index
    %15 = vector.load %arg12[%c14, %c0_16] : memref<98x32xf32, #tpu.memory_space<vmem>>, vector<2x32xf32>
    %c0_17 = arith.constant 0 : index
    %c96 = arith.constant 96 : index
    %16 = vector.load %arg13[%c0_17, %c96] : memref<18x288xf32, #tpu.memory_space<vmem>>, vector<2x32xf32>
    tpu.vector_store %arg13[%c0_17, %c96], %15 {strides = array<i32>} : memref<18x288xf32, #tpu.memory_space<vmem>>, vector<2x32xf32>,
    %c16 = arith.constant 16 : index
    %c0_18 = arith.constant 0 : index
    %17 = vector.load %arg12[%c16, %c0_18] : memref<98x32xf32, #tpu.memory_space<vmem>>, vector<2x32xf32>
    %c0_19 = arith.constant 0 : index
    %c128 = arith.constant 128 : index
    %18 = vector.load %arg13[%c0_19, %c128] : memref<18x288xf32, #tpu.memory_space<vmem>>, vector<2x32xf32>
    tpu.vector_store %arg13[%c0_19, %c128], %17 {strides = array<i32>} : memref<18x288xf32, #tpu.memory_space<vmem>>, vector<2x32xf32>,
    %c18 = arith.constant 18 : index
    %c0_20 = arith.constant 0 : index
    %19 = vector.load %arg12[%c18, %c0_20] : memref<98x32xf32, #tpu.memory_space<vmem>>, vector<2x32xf32>
    %c0_21 = arith.constant 0 : index
    %c160 = arith.constant 160 : index
    %20 = vector.load %arg13[%c0_21, %c160] : memref<18x288xf32, #tpu.memory_space<vmem>>, vector<2x32xf32>
    tpu.vector_store %arg13[%c0_21, %c160], %19 {strides = array<i32>} : memref<18x288xf32, #tpu.memory_space<vmem>>, vector<2x32xf32>,
    %c28 = arith.constant 28 : index
    %c0_22 = arith.constant 0 : index
    %21 = vector.load %arg12[%c28, %c0_22] : memref<98x32xf32, #tpu.memory_space<vmem>>, vector<2x32xf32>
    %c0_23 = arith.constant 0 : index
    %c192 = arith.constant 192 : index
    %22 = vector.load %arg13[%c0_23, %c192] : memref<18x288xf32, #tpu.memory_space<vmem>>, vector<2x32xf32>
    tpu.vector_store %arg13[%c0_23, %c192], %21 {strides = array<i32>} : memref<18x288xf32, #tpu.memory_space<vmem>>, vector<2x32xf32>,
    %c30 = arith.constant 30 : index
    %c0_24 = arith.constant 0 : index
    %23 = vector.load %arg12[%c30, %c0_24] : memref<98x32xf32, #tpu.memory_space<vmem>>, vector<2x32xf32>
    %c0_25 = arith.constant 0 : index
    %c224 = arith.constant 224 : index
    %24 = vector.load %arg13[%c0_25, %c224] : memref<18x288xf32, #tpu.memory_space<vmem>>, vector<2x32xf32>
    tpu.vector_store %arg13[%c0_25, %c224], %23 {strides = array<i32>} : memref<18x288xf32, #tpu.memory_space<vmem>>, vector<2x32xf32>,
    %c32_26 = arith.constant 32 : index
    %c0_27 = arith.constant 0 : index
    %25 = vector.load %arg12[%c32_26, %c0_27] : memref<98x32xf32, #tpu.memory_space<vmem>>, vector<2x32xf32>
    %c0_28 = arith.constant 0 : index
    %c256 = arith.constant 256 : index
    %26 = vector.load %arg13[%c0_28, %c256] : memref<18x288xf32, #tpu.memory_space<vmem>>, vector<2x32xf32>
    tpu.vector_store %arg13[%c0_28, %c256], %25 {strides = array<i32>} : memref<18x288xf32, #tpu.memory_space<vmem>>, vector<2x32xf32>,
    %c4_29 = arith.constant 4 : index
    %c0_30 = arith.constant 0 : index
    %27 = vector.load %arg12[%c4_29, %c0_30] : memref<98x32xf32, #tpu.memory_space<vmem>>, vector<2x32xf32>
    %c2_31 = arith.constant 2 : index
    %c0_32 = arith.constant 0 : index
    %28 = vector.load %arg13[%c2_31, %c0_32] : memref<18x288xf32, #tpu.memory_space<vmem>>, vector<2x32xf32>
    tpu.vector_store %arg13[%c2_31, %c0_32], %27 {strides = array<i32>} : memref<18x288xf32, #tpu.memory_space<vmem>>, vector<2x32xf32>,
    %c6 = arith.constant 6 : index
    %c0_33 = arith.constant 0 : index
    %29 = vector.load %arg12[%c6, %c0_33] : memref<98x32xf32, #tpu.memory_space<vmem>>, vector<2x32xf32>
    %c2_34 = arith.constant 2 : index
    %c32_35 = arith.constant 32 : index
    %30 = vector.load %arg13[%c2_34, %c32_35] : memref<18x288xf32, #tpu.memory_space<vmem>>, vector<2x32xf32>
    tpu.vector_store %arg13[%c2_34, %c32_35], %29 {strides = array<i32>} : memref<18x288xf32, #tpu.memory_space<vmem>>, vector<2x32xf32>,
    %c8 = arith.constant 8 : index
    %c0_36 = arith.constant 0 : index
    %31 = vector.load %arg12[%c8, %c0_36] : memref<98x32xf32, #tpu.memory_space<vmem>>, vector<2x32xf32>
    %c2_37 = arith.constant 2 : index
    %c64_38 = arith.constant 64 : index
    %32 = vector.load %arg13[%c2_37, %c64_38] : memref<18x288xf32, #tpu.memory_space<vmem>>, vector<2x32xf32>
    tpu.vector_store %arg13[%c2_37, %c64_38], %31 {strides = array<i32>} : memref<18x288xf32, #tpu.memory_space<vmem>>, vector<2x32xf32>,
    %c18_39 = arith.constant 18 : index
    %c0_40 = arith.constant 0 : index
    %33 = vector.load %arg12[%c18_39, %c0_40] : memref<98x32xf32, #tpu.memory_space<vmem>>, vector<2x32xf32>
    %c2_41 = arith.constant 2 : index
    %c96_42 = arith.constant 96 : index
    %34 = vector.load %arg13[%c2_41, %c96_42] : memref<18x288xf32, #tpu.memory_space<vmem>>, vector<2x32xf32>
    tpu.vector_store %arg13[%c2_41, %c96_42], %33 {strides = array<i32>} : memref<18x288xf32, #tpu.memory_space<vmem>>, vector<2x32xf32>,
    %c20 = arith.constant 20 : index
    %c0_43 = arith.constant 0 : index
    %35 = vector.load %arg12[%c20, %c0_43] : memref<98x32xf32, #tpu.memory_space<vmem>>, vector<2x32xf32>
    %c2_44 = arith.constant 2 : index
    %c128_45 = arith.constant 128 : index
    %36 = vector.load %arg13[%c2_44, %c128_45] : memref<18x288xf32, #tpu.memory_space<vmem>>, vector<2x32xf32>
    tpu.vector_store %arg13[%c2_44, %c128_45], %35 {strides = array<i32>} : memref<18x288xf32, #tpu.memory_space<vmem>>, vector<2x32xf32>,
    %c22 = arith.constant 22 : index
    %c0_46 = arith.constant 0 : index
    %37 = vector.load %arg12[%c22, %c0_46] : memref<98x32xf32, #tpu.memory_space<vmem>>, vector<2x32xf32>
    %c2_47 = arith.constant 2 : index
    %c160_48 = arith.constant 160 : index
    %38 = vector.load %arg13[%c2_47, %c160_48] : memref<18x288xf32, #tpu.memory_space<vmem>>, vector<2x32xf32>
    tpu.vector_store %arg13[%c2_47, %c160_48], %37 {strides = array<i32>} : memref<18x288xf32, #tpu.memory_space<vmem>>, vector<2x32xf32>,
    %c32_49 = arith.constant 32 : index
    %c0_50 = arith.constant 0 : index
    %39 = vector.load %arg12[%c32_49, %c0_50] : memref<98x32xf32, #tpu.memory_space<vmem>>, vector<2x32xf32>
    %c2_51 = arith.constant 2 : index
    %c192_52 = arith.constant 192 : index
    %40 = vector.load %arg13[%c2_51, %c192_52] : memref<18x288xf32, #tpu.memory_space<vmem>>, vector<2x32xf32>
    tpu.vector_store %arg13[%c2_51, %c192_52], %39 {strides = array<i32>} : memref<18x288xf32, #tpu.memory_space<vmem>>, vector<2x32xf32>,
    %c34 = arith.constant 34 : index
    %c0_53 = arith.constant 0 : index
    %41 = vector.load %arg12[%c34, %c0_53] : memref<98x32xf32, #tpu.memory_space<vmem>>, vector<2x32xf32>
    %c2_54 = arith.constant 2 : index
    %c224_55 = arith.constant 224 : index
    %42 = vector.load %arg13[%c2_54, %c224_55] : memref<18x288xf32, #tpu.memory_space<vmem>>, vector<2x32xf32>
    tpu.vector_store %arg13[%c2_54, %c224_55], %41 {strides = array<i32>} : memref<18x288xf32, #tpu.memory_space<vmem>>, vector<2x32xf32>,
    %c36 = arith.constant 36 : index
    %c0_56 = arith.constant 0 : index
    %43 = vector.load %arg12[%c36, %c0_56] : memref<98x32xf32, #tpu.memory_space<vmem>>, vector<2x32xf32>
    %c2_57 = arith.constant 2 : index
    %c256_58 = arith.constant 256 : index
    %44 = vector.load %arg13[%c2_57, %c256_58] : memref<18x288xf32, #tpu.memory_space<vmem>>, vector<2x32xf32>
    tpu.vector_store %arg13[%c2_57, %c256_58], %43 {strides = array<i32>} : memref<18x288xf32, #tpu.memory_space<vmem>>, vector<2x32xf32>,
    %c8_59 = arith.constant 8 : index
    %c0_60 = arith.constant 0 : index
    %45 = vector.load %arg12[%c8_59, %c0_60] : memref<98x32xf32, #tpu.memory_space<vmem>>, vector<2x32xf32>
    %c4_61 = arith.constant 4 : index
    %c0_62 = arith.constant 0 : index
    %46 = vector.load %arg13[%c4_61, %c0_62] : memref<18x288xf32, #tpu.memory_space<vmem>>, vector<2x32xf32>
    tpu.vector_store %arg13[%c4_61, %c0_62], %45 {strides = array<i32>} : memref<18x288xf32, #tpu.memory_space<vmem>>, vector<2x32xf32>,
    %c10 = arith.constant 10 : index
    %c0_63 = arith.constant 0 : index
    %47 = vector.load %arg12[%c10, %c0_63] : memref<98x32xf32, #tpu.memory_space<vmem>>, vector<2x32xf32>
    %c4_64 = arith.constant 4 : index
    %c32_65 = arith.constant 32 : index
    %48 = vector.load %arg13[%c4_64, %c32_65] : memref<18x288xf32, #tpu.memory_space<vmem>>, vector<2x32xf32>
    tpu.vector_store %arg13[%c4_64, %c32_65], %47 {strides = array<i32>} : memref<18x288xf32, #tpu.memory_space<vmem>>, vector<2x32xf32>,
    %c12 = arith.constant 12 : index
    %c0_66 = arith.constant 0 : index
    %49 = vector.load %arg12[%c12, %c0_66] : memref<98x32xf32, #tpu.memory_space<vmem>>, vector<2x32xf32>
    %c4_67 = arith.constant 4 : index
    %c64_68 = arith.constant 64 : index
    %50 = vector.load %arg13[%c4_67, %c64_68] : memref<18x288xf32, #tpu.memory_space<vmem>>, vector<2x32xf32>
    tpu.vector_store %arg13[%c4_67, %c64_68], %49 {strides = array<i32>} : memref<18x288xf32, #tpu.memory_space<vmem>>, vector<2x32xf32>,
    %c22_69 = arith.constant 22 : index
    %c0_70 = arith.constant 0 : index
    %51 = vector.load %arg12[%c22_69, %c0_70] : memref<98x32xf32, #tpu.memory_space<vmem>>, vector<2x32xf32>
    %c4_71 = arith.constant 4 : index
    %c96_72 = arith.constant 96 : index
    %52 = vector.load %arg13[%c4_71, %c96_72] : memref<18x288xf32, #tpu.memory_space<vmem>>, vector<2x32xf32>
    tpu.vector_store %arg13[%c4_71, %c96_72], %51 {strides = array<i32>} : memref<18x288xf32, #tpu.memory_space<vmem>>, vector<2x32xf32>,
    %c24 = arith.constant 24 : index
    %c0_73 = arith.constant 0 : index
    %53 = vector.load %arg12[%c24, %c0_73] : memref<98x32xf32, #tpu.memory_space<vmem>>, vector<2x32xf32>
    %c4_74 = arith.constant 4 : index
    %c128_75 = arith.constant 128 : index
    %54 = vector.load %arg13[%c4_74, %c128_75] : memref<18x288xf32, #tpu.memory_space<vmem>>, vector<2x32xf32>
    tpu.vector_store %arg13[%c4_74, %c128_75], %53 {strides = array<i32>} : memref<18x288xf32, #tpu.memory_space<vmem>>, vector<2x32xf32>,
    %c26 = arith.constant 26 : index
    %c0_76 = arith.constant 0 : index
    %55 = vector.load %arg12[%c26, %c0_76] : memref<98x32xf32, #tpu.memory_space<vmem>>, vector<2x32xf32>
    %c4_77 = arith.constant 4 : index
    %c160_78 = arith.constant 160 : index
    %56 = vector.load %arg13[%c4_77, %c160_78] : memref<18x288xf32, #tpu.memory_space<vmem>>, vector<2x32xf32>
    tpu.vector_store %arg13[%c4_77, %c160_78], %55 {strides = array<i32>} : memref<18x288xf32, #tpu.memory_space<vmem>>, vector<2x32xf32>,
    %c36_79 = arith.constant 36 : index
    %c0_80 = arith.constant 0 : index
    %57 = vector.load %arg12[%c36_79, %c0_80] : memref<98x32xf32, #tpu.memory_space<vmem>>, vector<2x32xf32>
    %c4_81 = arith.constant 4 : index
    %c192_82 = arith.constant 192 : index
    %58 = vector.load %arg13[%c4_81, %c192_82] : memref<18x288xf32, #tpu.memory_space<vmem>>, vector<2x32xf32>
    tpu.vector_store %arg13[%c4_81, %c192_82], %57 {strides = array<i32>} : memref<18x288xf32, #tpu.memory_space<vmem>>, vector<2x32xf32>,
    %c38 = arith.constant 38 : index
    %c0_83 = arith.constant 0 : index
    %59 = vector.load %arg12[%c38, %c0_83] : memref<98x32xf32, #tpu.memory_space<vmem>>, vector<2x32xf32>
    %c4_84 = arith.constant 4 : index
    %c224_85 = arith.constant 224 : index
    %60 = vector.load %arg13[%c4_84, %c224_85] : memref<18x288xf32, #tpu.memory_space<vmem>>, vector<2x32xf32>
    tpu.vector_store %arg13[%c4_84, %c224_85], %59 {strides = array<i32>} : memref<18x288xf32, #tpu.memory_space<vmem>>, vector<2x32xf32>,
    %c40 = arith.constant 40 : index
    %c0_86 = arith.constant 0 : index
    %61 = vector.load %arg12[%c40, %c0_86] : memref<98x32xf32, #tpu.memory_space<vmem>>, vector<2x32xf32>
    %c4_87 = arith.constant 4 : index
    %c256_88 = arith.constant 256 : index
    %62 = vector.load %arg13[%c4_87, %c256_88] : memref<18x288xf32, #tpu.memory_space<vmem>>, vector<2x32xf32>
    tpu.vector_store %arg13[%c4_87, %c256_88], %61 {strides = array<i32>} : memref<18x288xf32, #tpu.memory_space<vmem>>, vector<2x32xf32>,
    %c28_89 = arith.constant 28 : index
    %c0_90 = arith.constant 0 : index
    %63 = vector.load %arg12[%c28_89, %c0_90] : memref<98x32xf32, #tpu.memory_space<vmem>>, vector<2x32xf32>
    %c6_91 = arith.constant 6 : index
    %c0_92 = arith.constant 0 : index
    %64 = vector.load %arg13[%c6_91, %c0_92] : memref<18x288xf32, #tpu.memory_space<vmem>>, vector<2x32xf32>
    tpu.vector_store %arg13[%c6_91, %c0_92], %63 {strides = array<i32>} : memref<18x288xf32, #tpu.memory_space<vmem>>, vector<2x32xf32>,
    %c30_93 = arith.constant 30 : index
    %c0_94 = arith.constant 0 : index
    %65 = vector.load %arg12[%c30_93, %c0_94] : memref<98x32xf32, #tpu.memory_space<vmem>>, vector<2x32xf32>
    %c6_95 = arith.constant 6 : index
    %c32_96 = arith.constant 32 : index
    %66 = vector.load %arg13[%c6_95, %c32_96] : memref<18x288xf32, #tpu.memory_space<vmem>>, vector<2x32xf32>
    tpu.vector_store %arg13[%c6_95, %c32_96], %65 {strides = array<i32>} : memref<18x288xf32, #tpu.memory_space<vmem>>, vector<2x32xf32>,
    %c32_97 = arith.constant 32 : index
    %c0_98 = arith.constant 0 : index
    %67 = vector.load %arg12[%c32_97, %c0_98] : memref<98x32xf32, #tpu.memory_space<vmem>>, vector<2x32xf32>
    %c6_99 = arith.constant 6 : index
    %c64_100 = arith.constant 64 : index
    %68 = vector.load %arg13[%c6_99, %c64_100] : memref<18x288xf32, #tpu.memory_space<vmem>>, vector<2x32xf32>
    tpu.vector_store %arg13[%c6_99, %c64_100], %67 {strides = array<i32>} : memref<18x288xf32, #tpu.memory_space<vmem>>, vector<2x32xf32>,
    %c42 = arith.constant 42 : index
    %c0_101 = arith.constant 0 : index
    %69 = vector.load %arg12[%c42, %c0_101] : memref<98x32xf32, #tpu.memory_space<vmem>>, vector<2x32xf32>
    %c6_102 = arith.constant 6 : index
    %c96_103 = arith.constant 96 : index
    %70 = vector.load %arg13[%c6_102, %c96_103] : memref<18x288xf32, #tpu.memory_space<vmem>>, vector<2x32xf32>
    tpu.vector_store %arg13[%c6_102, %c96_103], %69 {strides = array<i32>} : memref<18x288xf32, #tpu.memory_space<vmem>>, vector<2x32xf32>,
    %c44 = arith.constant 44 : index
    %c0_104 = arith.constant 0 : index
    %71 = vector.load %arg12[%c44, %c0_104] : memref<98x32xf32, #tpu.memory_space<vmem>>, vector<2x32xf32>
    %c6_105 = arith.constant 6 : index
    %c128_106 = arith.constant 128 : index
    %72 = vector.load %arg13[%c6_105, %c128_106] : memref<18x288xf32, #tpu.memory_space<vmem>>, vector<2x32xf32>
    tpu.vector_store %arg13[%c6_105, %c128_106], %71 {strides = array<i32>} : memref<18x288xf32, #tpu.memory_space<vmem>>, vector<2x32xf32>,
    %c46 = arith.constant 46 : index
    %c0_107 = arith.constant 0 : index
    %73 = vector.load %arg12[%c46, %c0_107] : memref<98x32xf32, #tpu.memory_space<vmem>>, vector<2x32xf32>
    %c6_108 = arith.constant 6 : index
    %c160_109 = arith.constant 160 : index
    %74 = vector.load %arg13[%c6_108, %c160_109] : memref<18x288xf32, #tpu.memory_space<vmem>>, vector<2x32xf32>
    tpu.vector_store %arg13[%c6_108, %c160_109], %73 {strides = array<i32>} : memref<18x288xf32, #tpu.memory_space<vmem>>, vector<2x32xf32>,
    %c56 = arith.constant 56 : index
    %c0_110 = arith.constant 0 : index
    %75 = vector.load %arg12[%c56, %c0_110] : memref<98x32xf32, #tpu.memory_space<vmem>>, vector<2x32xf32>
    %c6_111 = arith.constant 6 : index
    %c192_112 = arith.constant 192 : index
    %76 = vector.load %arg13[%c6_111, %c192_112] : memref<18x288xf32, #tpu.memory_space<vmem>>, vector<2x32xf32>
    tpu.vector_store %arg13[%c6_111, %c192_112], %75 {strides = array<i32>} : memref<18x288xf32, #tpu.memory_space<vmem>>, vector<2x32xf32>,
    %c58 = arith.constant 58 : index
    %c0_113 = arith.constant 0 : index
    %77 = vector.load %arg12[%c58, %c0_113] : memref<98x32xf32, #tpu.memory_space<vmem>>, vector<2x32xf32>
    %c6_114 = arith.constant 6 : index
    %c224_115 = arith.constant 224 : index
    %78 = vector.load %arg13[%c6_114, %c224_115] : memref<18x288xf32, #tpu.memory_space<vmem>>, vector<2x32xf32>
    tpu.vector_store %arg13[%c6_114, %c224_115], %77 {strides = array<i32>} : memref<18x288xf32, #tpu.memory_space<vmem>>, vector<2x32xf32>,
    %c60 = arith.constant 60 : index
    %c0_116 = arith.constant 0 : index
    %79 = vector.load %arg12[%c60, %c0_116] : memref<98x32xf32, #tpu.memory_space<vmem>>, vector<2x32xf32>
    %c6_117 = arith.constant 6 : index
    %c256_118 = arith.constant 256 : index
    %80 = vector.load %arg13[%c6_117, %c256_118] : memref<18x288xf32, #tpu.memory_space<vmem>>, vector<2x32xf32>
    tpu.vector_store %arg13[%c6_117, %c256_118], %79 {strides = array<i32>} : memref<18x288xf32, #tpu.memory_space<vmem>>, vector<2x32xf32>,
    %c32_119 = arith.constant 32 : index
    %c0_120 = arith.constant 0 : index
    %81 = vector.load %arg12[%c32_119, %c0_120] : memref<98x32xf32, #tpu.memory_space<vmem>>, vector<2x32xf32>
    %c8_121 = arith.constant 8 : index
    %c0_122 = arith.constant 0 : index
    %82 = vector.load %arg13[%c8_121, %c0_122] : memref<18x288xf32, #tpu.memory_space<vmem>>, vector<2x32xf32>
    tpu.vector_store %arg13[%c8_121, %c0_122], %81 {strides = array<i32>} : memref<18x288xf32, #tpu.memory_space<vmem>>, vector<2x32xf32>,
    %c34_123 = arith.constant 34 : index
    %c0_124 = arith.constant 0 : index
    %83 = vector.load %arg12[%c34_123, %c0_124] : memref<98x32xf32, #tpu.memory_space<vmem>>, vector<2x32xf32>
    %c8_125 = arith.constant 8 : index
    %c32_126 = arith.constant 32 : index
    %84 = vector.load %arg13[%c8_125, %c32_126] : memref<18x288xf32, #tpu.memory_space<vmem>>, vector<2x32xf32>
    tpu.vector_store %arg13[%c8_125, %c32_126], %83 {strides = array<i32>} : memref<18x288xf32, #tpu.memory_space<vmem>>, vector<2x32xf32>,
    %c36_127 = arith.constant 36 : index
    %c0_128 = arith.constant 0 : index
    %85 = vector.load %arg12[%c36_127, %c0_128] : memref<98x32xf32, #tpu.memory_space<vmem>>, vector<2x32xf32>
    %c8_129 = arith.constant 8 : index
    %c64_130 = arith.constant 64 : index
    %86 = vector.load %arg13[%c8_129, %c64_130] : memref<18x288xf32, #tpu.memory_space<vmem>>, vector<2x32xf32>
    tpu.vector_store %arg13[%c8_129, %c64_130], %85 {strides = array<i32>} : memref<18x288xf32, #tpu.memory_space<vmem>>, vector<2x32xf32>,
    %c46_131 = arith.constant 46 : index
    %c0_132 = arith.constant 0 : index
    %87 = vector.load %arg12[%c46_131, %c0_132] : memref<98x32xf32, #tpu.memory_space<vmem>>, vector<2x32xf32>
    %c8_133 = arith.constant 8 : index
    %c96_134 = arith.constant 96 : index
    %88 = vector.load %arg13[%c8_133, %c96_134] : memref<18x288xf32, #tpu.memory_space<vmem>>, vector<2x32xf32>
    tpu.vector_store %arg13[%c8_133, %c96_134], %87 {strides = array<i32>} : memref<18x288xf32, #tpu.memory_space<vmem>>, vector<2x32xf32>,
    %c48 = arith.constant 48 : index
    %c0_135 = arith.constant 0 : index
    %89 = vector.load %arg12[%c48, %c0_135] : memref<98x32xf32, #tpu.memory_space<vmem>>, vector<2x32xf32>
    %c8_136 = arith.constant 8 : index
    %c128_137 = arith.constant 128 : index
    %90 = vector.load %arg13[%c8_136, %c128_137] : memref<18x288xf32, #tpu.memory_space<vmem>>, vector<2x32xf32>
    tpu.vector_store %arg13[%c8_136, %c128_137], %89 {strides = array<i32>} : memref<18x288xf32, #tpu.memory_space<vmem>>, vector<2x32xf32>,
    %c50 = arith.constant 50 : index
    %c0_138 = arith.constant 0 : index
    %91 = vector.load %arg12[%c50, %c0_138] : memref<98x32xf32, #tpu.memory_space<vmem>>, vector<2x32xf32>
    %c8_139 = arith.constant 8 : index
    %c160_140 = arith.constant 160 : index
    %92 = vector.load %arg13[%c8_139, %c160_140] : memref<18x288xf32, #tpu.memory_space<vmem>>, vector<2x32xf32>
    tpu.vector_store %arg13[%c8_139, %c160_140], %91 {strides = array<i32>} : memref<18x288xf32, #tpu.memory_space<vmem>>, vector<2x32xf32>,
    %c60_141 = arith.constant 60 : index
    %c0_142 = arith.constant 0 : index
    %93 = vector.load %arg12[%c60_141, %c0_142] : memref<98x32xf32, #tpu.memory_space<vmem>>, vector<2x32xf32>
    %c8_143 = arith.constant 8 : index
    %c192_144 = arith.constant 192 : index
    %94 = vector.load %arg13[%c8_143, %c192_144] : memref<18x288xf32, #tpu.memory_space<vmem>>, vector<2x32xf32>
    tpu.vector_store %arg13[%c8_143, %c192_144], %93 {strides = array<i32>} : memref<18x288xf32, #tpu.memory_space<vmem>>, vector<2x32xf32>,
    %c62 = arith.constant 62 : index
    %c0_145 = arith.constant 0 : index
    %95 = vector.load %arg12[%c62, %c0_145] : memref<98x32xf32, #tpu.memory_space<vmem>>, vector<2x32xf32>
    %c8_146 = arith.constant 8 : index
    %c224_147 = arith.constant 224 : index
    %96 = vector.load %arg13[%c8_146, %c224_147] : memref<18x288xf32, #tpu.memory_space<vmem>>, vector<2x32xf32>
    tpu.vector_store %arg13[%c8_146, %c224_147], %95 {strides = array<i32>} : memref<18x288xf32, #tpu.memory_space<vmem>>, vector<2x32xf32>,
    %c64_148 = arith.constant 64 : index
    %c0_149 = arith.constant 0 : index
    %97 = vector.load %arg12[%c64_148, %c0_149] : memref<98x32xf32, #tpu.memory_space<vmem>>, vector<2x32xf32>
    %c8_150 = arith.constant 8 : index
    %c256_151 = arith.constant 256 : index
    %98 = vector.load %arg13[%c8_150, %c256_151] : memref<18x288xf32, #tpu.memory_space<vmem>>, vector<2x32xf32>
    tpu.vector_store %arg13[%c8_150, %c256_151], %97 {strides = array<i32>} : memref<18x288xf32, #tpu.memory_space<vmem>>, vector<2x32xf32>,
    %c36_152 = arith.constant 36 : index
    %c0_153 = arith.constant 0 : index
    %99 = vector.load %arg12[%c36_152, %c0_153] : memref<98x32xf32, #tpu.memory_space<vmem>>, vector<2x32xf32>
    %c10_154 = arith.constant 10 : index
    %c0_155 = arith.constant 0 : index
    %100 = vector.load %arg13[%c10_154, %c0_155] : memref<18x288xf32, #tpu.memory_space<vmem>>, vector<2x32xf32>
    tpu.vector_store %arg13[%c10_154, %c0_155], %99 {strides = array<i32>} : memref<18x288xf32, #tpu.memory_space<vmem>>, vector<2x32xf32>,
    %c38_156 = arith.constant 38 : index
    %c0_157 = arith.constant 0 : index
    %101 = vector.load %arg12[%c38_156, %c0_157] : memref<98x32xf32, #tpu.memory_space<vmem>>, vector<2x32xf32>
    %c10_158 = arith.constant 10 : index
    %c32_159 = arith.constant 32 : index
    %102 = vector.load %arg13[%c10_158, %c32_159] : memref<18x288xf32, #tpu.memory_space<vmem>>, vector<2x32xf32>
    tpu.vector_store %arg13[%c10_158, %c32_159], %101 {strides = array<i32>} : memref<18x288xf32, #tpu.memory_space<vmem>>, vector<2x32xf32>,
    %c40_160 = arith.constant 40 : index
    %c0_161 = arith.constant 0 : index
    %103 = vector.load %arg12[%c40_160, %c0_161] : memref<98x32xf32, #tpu.memory_space<vmem>>, vector<2x32xf32>
    %c10_162 = arith.constant 10 : index
    %c64_163 = arith.constant 64 : index
    %104 = vector.load %arg13[%c10_162, %c64_163] : memref<18x288xf32, #tpu.memory_space<vmem>>, vector<2x32xf32>
    tpu.vector_store %arg13[%c10_162, %c64_163], %103 {strides = array<i32>} : memref<18x288xf32, #tpu.memory_space<vmem>>, vector<2x32xf32>,
    %c50_164 = arith.constant 50 : index
    %c0_165 = arith.constant 0 : index
    %105 = vector.load %arg12[%c50_164, %c0_165] : memref<98x32xf32, #tpu.memory_space<vmem>>, vector<2x32xf32>
    %c10_166 = arith.constant 10 : index
    %c96_167 = arith.constant 96 : index
    %106 = vector.load %arg13[%c10_166, %c96_167] : memref<18x288xf32, #tpu.memory_space<vmem>>, vector<2x32xf32>
    tpu.vector_store %arg13[%c10_166, %c96_167], %105 {strides = array<i32>} : memref<18x288xf32, #tpu.memory_space<vmem>>, vector<2x32xf32>,
    %c52 = arith.constant 52 : index
    %c0_168 = arith.constant 0 : index
    %107 = vector.load %arg12[%c52, %c0_168] : memref<98x32xf32, #tpu.memory_space<vmem>>, vector<2x32xf32>
    %c10_169 = arith.constant 10 : index
    %c128_170 = arith.constant 128 : index
    %108 = vector.load %arg13[%c10_169, %c128_170] : memref<18x288xf32, #tpu.memory_space<vmem>>, vector<2x32xf32>
    tpu.vector_store %arg13[%c10_169, %c128_170], %107 {strides = array<i32>} : memref<18x288xf32, #tpu.memory_space<vmem>>, vector<2x32xf32>,
    %c54 = arith.constant 54 : index
    %c0_171 = arith.constant 0 : index
    %109 = vector.load %arg12[%c54, %c0_171] : memref<98x32xf32, #tpu.memory_space<vmem>>, vector<2x32xf32>
    %c10_172 = arith.constant 10 : index
    %c160_173 = arith.constant 160 : index
    %110 = vector.load %arg13[%c10_172, %c160_173] : memref<18x288xf32, #tpu.memory_space<vmem>>, vector<2x32xf32>
    tpu.vector_store %arg13[%c10_172, %c160_173], %109 {strides = array<i32>} : memref<18x288xf32, #tpu.memory_space<vmem>>, vector<2x32xf32>,
    %c64_174 = arith.constant 64 : index
    %c0_175 = arith.constant 0 : index
    %111 = vector.load %arg12[%c64_174, %c0_175] : memref<98x32xf32, #tpu.memory_space<vmem>>, vector<2x32xf32>
    %c10_176 = arith.constant 10 : index
    %c192_177 = arith.constant 192 : index
    %112 = vector.load %arg13[%c10_176, %c192_177] : memref<18x288xf32, #tpu.memory_space<vmem>>, vector<2x32xf32>
    tpu.vector_store %arg13[%c10_176, %c192_177], %111 {strides = array<i32>} : memref<18x288xf32, #tpu.memory_space<vmem>>, vector<2x32xf32>,
    %c66 = arith.constant 66 : index
    %c0_178 = arith.constant 0 : index
    %113 = vector.load %arg12[%c66, %c0_178] : memref<98x32xf32, #tpu.memory_space<vmem>>, vector<2x32xf32>
    %c10_179 = arith.constant 10 : index
    %c224_180 = arith.constant 224 : index
    %114 = vector.load %arg13[%c10_179, %c224_180] : memref<18x288xf32, #tpu.memory_space<vmem>>, vector<2x32xf32>
    tpu.vector_store %arg13[%c10_179, %c224_180], %113 {strides = array<i32>} : memref<18x288xf32, #tpu.memory_space<vmem>>, vector<2x32xf32>,
    %c68 = arith.constant 68 : index
    %c0_181 = arith.constant 0 : index
    %115 = vector.load %arg12[%c68, %c0_181] : memref<98x32xf32, #tpu.memory_space<vmem>>, vector<2x32xf32>
    %c10_182 = arith.constant 10 : index
    %c256_183 = arith.constant 256 : index
    %116 = vector.load %arg13[%c10_182, %c256_183] : memref<18x288xf32, #tpu.memory_space<vmem>>, vector<2x32xf32>
    tpu.vector_store %arg13[%c10_182, %c256_183], %115 {strides = array<i32>} : memref<18x288xf32, #tpu.memory_space<vmem>>, vector<2x32xf32>,
    %c56_184 = arith.constant 56 : index
    %c0_185 = arith.constant 0 : index
    %117 = vector.load %arg12[%c56_184, %c0_185] : memref<98x32xf32, #tpu.memory_space<vmem>>, vector<2x32xf32>
    %c12_186 = arith.constant 12 : index
    %c0_187 = arith.constant 0 : index
    %118 = vector.load %arg13[%c12_186, %c0_187] : memref<18x288xf32, #tpu.memory_space<vmem>>, vector<2x32xf32>
    tpu.vector_store %arg13[%c12_186, %c0_187], %117 {strides = array<i32>} : memref<18x288xf32, #tpu.memory_space<vmem>>, vector<2x32xf32>,
    %c58_188 = arith.constant 58 : index
    %c0_189 = arith.constant 0 : index
    %119 = vector.load %arg12[%c58_188, %c0_189] : memref<98x32xf32, #tpu.memory_space<vmem>>, vector<2x32xf32>
    %c12_190 = arith.constant 12 : index
    %c32_191 = arith.constant 32 : index
    %120 = vector.load %arg13[%c12_190, %c32_191] : memref<18x288xf32, #tpu.memory_space<vmem>>, vector<2x32xf32>
    tpu.vector_store %arg13[%c12_190, %c32_191], %119 {strides = array<i32>} : memref<18x288xf32, #tpu.memory_space<vmem>>, vector<2x32xf32>,
    %c60_192 = arith.constant 60 : index
    %c0_193 = arith.constant 0 : index
    %121 = vector.load %arg12[%c60_192, %c0_193] : memref<98x32xf32, #tpu.memory_space<vmem>>, vector<2x32xf32>
    %c12_194 = arith.constant 12 : index
    %c64_195 = arith.constant 64 : index
    %122 = vector.load %arg13[%c12_194, %c64_195] : memref<18x288xf32, #tpu.memory_space<vmem>>, vector<2x32xf32>
    tpu.vector_store %arg13[%c12_194, %c64_195], %121 {strides = array<i32>} : memref<18x288xf32, #tpu.memory_space<vmem>>, vector<2x32xf32>,
    %c70 = arith.constant 70 : index
    %c0_196 = arith.constant 0 : index
    %123 = vector.load %arg12[%c70, %c0_196] : memref<98x32xf32, #tpu.memory_space<vmem>>, vector<2x32xf32>
    %c12_197 = arith.constant 12 : index
    %c96_198 = arith.constant 96 : index
    %124 = vector.load %arg13[%c12_197, %c96_198] : memref<18x288xf32, #tpu.memory_space<vmem>>, vector<2x32xf32>
    tpu.vector_store %arg13[%c12_197, %c96_198], %123 {strides = array<i32>} : memref<18x288xf32, #tpu.memory_space<vmem>>, vector<2x32xf32>,
    %c72 = arith.constant 72 : index
    %c0_199 = arith.constant 0 : index
    %125 = vector.load %arg12[%c72, %c0_199] : memref<98x32xf32, #tpu.memory_space<vmem>>, vector<2x32xf32>
    %c12_200 = arith.constant 12 : index
    %c128_201 = arith.constant 128 : index
    %126 = vector.load %arg13[%c12_200, %c128_201] : memref<18x288xf32, #tpu.memory_space<vmem>>, vector<2x32xf32>
    tpu.vector_store %arg13[%c12_200, %c128_201], %125 {strides = array<i32>} : memref<18x288xf32, #tpu.memory_space<vmem>>, vector<2x32xf32>,
    %c74 = arith.constant 74 : index
    %c0_202 = arith.constant 0 : index
    %127 = vector.load %arg12[%c74, %c0_202] : memref<98x32xf32, #tpu.memory_space<vmem>>, vector<2x32xf32>
    %c12_203 = arith.constant 12 : index
    %c160_204 = arith.constant 160 : index
    %128 = vector.load %arg13[%c12_203, %c160_204] : memref<18x288xf32, #tpu.memory_space<vmem>>, vector<2x32xf32>
    tpu.vector_store %arg13[%c12_203, %c160_204], %127 {strides = array<i32>} : memref<18x288xf32, #tpu.memory_space<vmem>>, vector<2x32xf32>,
    %c84 = arith.constant 84 : index
    %c0_205 = arith.constant 0 : index
    %129 = vector.load %arg12[%c84, %c0_205] : memref<98x32xf32, #tpu.memory_space<vmem>>, vector<2x32xf32>
    %c12_206 = arith.constant 12 : index
    %c192_207 = arith.constant 192 : index
    %130 = vector.load %arg13[%c12_206, %c192_207] : memref<18x288xf32, #tpu.memory_space<vmem>>, vector<2x32xf32>
    tpu.vector_store %arg13[%c12_206, %c192_207], %129 {strides = array<i32>} : memref<18x288xf32, #tpu.memory_space<vmem>>, vector<2x32xf32>,
    %c86 = arith.constant 86 : index
    %c0_208 = arith.constant 0 : index
    %131 = vector.load %arg12[%c86, %c0_208] : memref<98x32xf32, #tpu.memory_space<vmem>>, vector<2x32xf32>
    %c12_209 = arith.constant 12 : index
    %c224_210 = arith.constant 224 : index
    %132 = vector.load %arg13[%c12_209, %c224_210] : memref<18x288xf32, #tpu.memory_space<vmem>>, vector<2x32xf32>
    tpu.vector_store %arg13[%c12_209, %c224_210], %131 {strides = array<i32>} : memref<18x288xf32, #tpu.memory_space<vmem>>, vector<2x32xf32>,
    %c88 = arith.constant 88 : index
    %c0_211 = arith.constant 0 : index
    %133 = vector.load %arg12[%c88, %c0_211] : memref<98x32xf32, #tpu.memory_space<vmem>>, vector<2x32xf32>
    %c12_212 = arith.constant 12 : index
    %c256_213 = arith.constant 256 : index
    %134 = vector.load %arg13[%c12_212, %c256_213] : memref<18x288xf32, #tpu.memory_space<vmem>>, vector<2x32xf32>
    tpu.vector_store %arg13[%c12_212, %c256_213], %133 {strides = array<i32>} : memref<18x288xf32, #tpu.memory_space<vmem>>, vector<2x32xf32>,
    %c60_214 = arith.constant 60 : index
    %c0_215 = arith.constant 0 : index
    %135 = vector.load %arg12[%c60_214, %c0_215] : memref<98x32xf32, #tpu.memory_space<vmem>>, vector<2x32xf32>
    %c14_216 = arith.constant 14 : index
    %c0_217 = arith.constant 0 : index
    %136 = vector.load %arg13[%c14_216, %c0_217] : memref<18x288xf32, #tpu.memory_space<vmem>>, vector<2x32xf32>
    tpu.vector_store %arg13[%c14_216, %c0_217], %135 {strides = array<i32>} : memref<18x288xf32, #tpu.memory_space<vmem>>, vector<2x32xf32>,
    %c62_218 = arith.constant 62 : index
    %c0_219 = arith.constant 0 : index
    %137 = vector.load %arg12[%c62_218, %c0_219] : memref<98x32xf32, #tpu.memory_space<vmem>>, vector<2x32xf32>
    %c14_220 = arith.constant 14 : index
    %c32_221 = arith.constant 32 : index
    %138 = vector.load %arg13[%c14_220, %c32_221] : memref<18x288xf32, #tpu.memory_space<vmem>>, vector<2x32xf32>
    tpu.vector_store %arg13[%c14_220, %c32_221], %137 {strides = array<i32>} : memref<18x288xf32, #tpu.memory_space<vmem>>, vector<2x32xf32>,
    %c64_222 = arith.constant 64 : index
    %c0_223 = arith.constant 0 : index
    %139 = vector.load %arg12[%c64_222, %c0_223] : memref<98x32xf32, #tpu.memory_space<vmem>>, vector<2x32xf32>
    %c14_224 = arith.constant 14 : index
    %c64_225 = arith.constant 64 : index
    %140 = vector.load %arg13[%c14_224, %c64_225] : memref<18x288xf32, #tpu.memory_space<vmem>>, vector<2x32xf32>
    tpu.vector_store %arg13[%c14_224, %c64_225], %139 {strides = array<i32>} : memref<18x288xf32, #tpu.memory_space<vmem>>, vector<2x32xf32>,
    %c74_226 = arith.constant 74 : index
    %c0_227 = arith.constant 0 : index
    %141 = vector.load %arg12[%c74_226, %c0_227] : memref<98x32xf32, #tpu.memory_space<vmem>>, vector<2x32xf32>
    %c14_228 = arith.constant 14 : index
    %c96_229 = arith.constant 96 : index
    %142 = vector.load %arg13[%c14_228, %c96_229] : memref<18x288xf32, #tpu.memory_space<vmem>>, vector<2x32xf32>
    tpu.vector_store %arg13[%c14_228, %c96_229], %141 {strides = array<i32>} : memref<18x288xf32, #tpu.memory_space<vmem>>, vector<2x32xf32>,
    %c76 = arith.constant 76 : index
    %c0_230 = arith.constant 0 : index
    %143 = vector.load %arg12[%c76, %c0_230] : memref<98x32xf32, #tpu.memory_space<vmem>>, vector<2x32xf32>
    %c14_231 = arith.constant 14 : index
    %c128_232 = arith.constant 128 : index
    %144 = vector.load %arg13[%c14_231, %c128_232] : memref<18x288xf32, #tpu.memory_space<vmem>>, vector<2x32xf32>
    tpu.vector_store %arg13[%c14_231, %c128_232], %143 {strides = array<i32>} : memref<18x288xf32, #tpu.memory_space<vmem>>, vector<2x32xf32>,
    %c78 = arith.constant 78 : index
    %c0_233 = arith.constant 0 : index
    %145 = vector.load %arg12[%c78, %c0_233] : memref<98x32xf32, #tpu.memory_space<vmem>>, vector<2x32xf32>
    %c14_234 = arith.constant 14 : index
    %c160_235 = arith.constant 160 : index
    %146 = vector.load %arg13[%c14_234, %c160_235] : memref<18x288xf32, #tpu.memory_space<vmem>>, vector<2x32xf32>
    tpu.vector_store %arg13[%c14_234, %c160_235], %145 {strides = array<i32>} : memref<18x288xf32, #tpu.memory_space<vmem>>, vector<2x32xf32>,
    %c88_236 = arith.constant 88 : index
    %c0_237 = arith.constant 0 : index
    %147 = vector.load %arg12[%c88_236, %c0_237] : memref<98x32xf32, #tpu.memory_space<vmem>>, vector<2x32xf32>
    %c14_238 = arith.constant 14 : index
    %c192_239 = arith.constant 192 : index
    %148 = vector.load %arg13[%c14_238, %c192_239] : memref<18x288xf32, #tpu.memory_space<vmem>>, vector<2x32xf32>
    tpu.vector_store %arg13[%c14_238, %c192_239], %147 {strides = array<i32>} : memref<18x288xf32, #tpu.memory_space<vmem>>, vector<2x32xf32>,
    %c90 = arith.constant 90 : index
    %c0_240 = arith.constant 0 : index
    %149 = vector.load %arg12[%c90, %c0_240] : memref<98x32xf32, #tpu.memory_space<vmem>>, vector<2x32xf32>
    %c14_241 = arith.constant 14 : index
    %c224_242 = arith.constant 224 : index
    %150 = vector.load %arg13[%c14_241, %c224_242] : memref<18x288xf32, #tpu.memory_space<vmem>>, vector<2x32xf32>
    tpu.vector_store %arg13[%c14_241, %c224_242], %149 {strides = array<i32>} : memref<18x288xf32, #tpu.memory_space<vmem>>, vector<2x32xf32>,
    %c92 = arith.constant 92 : index
    %c0_243 = arith.constant 0 : index
    %151 = vector.load %arg12[%c92, %c0_243] : memref<98x32xf32, #tpu.memory_space<vmem>>, vector<2x32xf32>
    %c14_244 = arith.constant 14 : index
    %c256_245 = arith.constant 256 : index
    %152 = vector.load %arg13[%c14_244, %c256_245] : memref<18x288xf32, #tpu.memory_space<vmem>>, vector<2x32xf32>
    tpu.vector_store %arg13[%c14_244, %c256_245], %151 {strides = array<i32>} : memref<18x288xf32, #tpu.memory_space<vmem>>, vector<2x32xf32>,
    %c64_246 = arith.constant 64 : index
    %c0_247 = arith.constant 0 : index
    %153 = vector.load %arg12[%c64_246, %c0_247] : memref<98x32xf32, #tpu.memory_space<vmem>>, vector<2x32xf32>
    %c16_248 = arith.constant 16 : index
    %c0_249 = arith.constant 0 : index
    %154 = vector.load %arg13[%c16_248, %c0_249] : memref<18x288xf32, #tpu.memory_space<vmem>>, vector<2x32xf32>
    tpu.vector_store %arg13[%c16_248, %c0_249], %153 {strides = array<i32>} : memref<18x288xf32, #tpu.memory_space<vmem>>, vector<2x32xf32>,
    %c66_250 = arith.constant 66 : index
    %c0_251 = arith.constant 0 : index
    %155 = vector.load %arg12[%c66_250, %c0_251] : memref<98x32xf32, #tpu.memory_space<vmem>>, vector<2x32xf32>
    %c16_252 = arith.constant 16 : index
    %c32_253 = arith.constant 32 : index
    %156 = vector.load %arg13[%c16_252, %c32_253] : memref<18x288xf32, #tpu.memory_space<vmem>>, vector<2x32xf32>
    tpu.vector_store %arg13[%c16_252, %c32_253], %155 {strides = array<i32>} : memref<18x288xf32, #tpu.memory_space<vmem>>, vector<2x32xf32>,
    %c68_254 = arith.constant 68 : index
    %c0_255 = arith.constant 0 : index
    %157 = vector.load %arg12[%c68_254, %c0_255] : memref<98x32xf32, #tpu.memory_space<vmem>>, vector<2x32xf32>
    %c16_256 = arith.constant 16 : index
    %c64_257 = arith.constant 64 : index
    %158 = vector.load %arg13[%c16_256, %c64_257] : memref<18x288xf32, #tpu.memory_space<vmem>>, vector<2x32xf32>
    tpu.vector_store %arg13[%c16_256, %c64_257], %157 {strides = array<i32>} : memref<18x288xf32, #tpu.memory_space<vmem>>, vector<2x32xf32>,
    %c78_258 = arith.constant 78 : index
    %c0_259 = arith.constant 0 : index
    %159 = vector.load %arg12[%c78_258, %c0_259] : memref<98x32xf32, #tpu.memory_space<vmem>>, vector<2x32xf32>
    %c16_260 = arith.constant 16 : index
    %c96_261 = arith.constant 96 : index
    %160 = vector.load %arg13[%c16_260, %c96_261] : memref<18x288xf32, #tpu.memory_space<vmem>>, vector<2x32xf32>
    tpu.vector_store %arg13[%c16_260, %c96_261], %159 {strides = array<i32>} : memref<18x288xf32, #tpu.memory_space<vmem>>, vector<2x32xf32>,
    %c80 = arith.constant 80 : index
    %c0_262 = arith.constant 0 : index
    %161 = vector.load %arg12[%c80, %c0_262] : memref<98x32xf32, #tpu.memory_space<vmem>>, vector<2x32xf32>
    %c16_263 = arith.constant 16 : index
    %c128_264 = arith.constant 128 : index
    %162 = vector.load %arg13[%c16_263, %c128_264] : memref<18x288xf32, #tpu.memory_space<vmem>>, vector<2x32xf32>
    tpu.vector_store %arg13[%c16_263, %c128_264], %161 {strides = array<i32>} : memref<18x288xf32, #tpu.memory_space<vmem>>, vector<2x32xf32>,
    %c82 = arith.constant 82 : index
    %c0_265 = arith.constant 0 : index
    %163 = vector.load %arg12[%c82, %c0_265] : memref<98x32xf32, #tpu.memory_space<vmem>>, vector<2x32xf32>
    %c16_266 = arith.constant 16 : index
    %c160_267 = arith.constant 160 : index
    %164 = vector.load %arg13[%c16_266, %c160_267] : memref<18x288xf32, #tpu.memory_space<vmem>>, vector<2x32xf32>
    tpu.vector_store %arg13[%c16_266, %c160_267], %163 {strides = array<i32>} : memref<18x288xf32, #tpu.memory_space<vmem>>, vector<2x32xf32>,
    %c92_268 = arith.constant 92 : index
    %c0_269 = arith.constant 0 : index
    %165 = vector.load %arg12[%c92_268, %c0_269] : memref<98x32xf32, #tpu.memory_space<vmem>>, vector<2x32xf32>
    %c16_270 = arith.constant 16 : index
    %c192_271 = arith.constant 192 : index
    %166 = vector.load %arg13[%c16_270, %c192_271] : memref<18x288xf32, #tpu.memory_space<vmem>>, vector<2x32xf32>
    tpu.vector_store %arg13[%c16_270, %c192_271], %165 {strides = array<i32>} : memref<18x288xf32, #tpu.memory_space<vmem>>, vector<2x32xf32>,
    %c94 = arith.constant 94 : index
    %c0_272 = arith.constant 0 : index
    %167 = vector.load %arg12[%c94, %c0_272] : memref<98x32xf32, #tpu.memory_space<vmem>>, vector<2x32xf32>
    %c16_273 = arith.constant 16 : index
    %c224_274 = arith.constant 224 : index
    %168 = vector.load %arg13[%c16_273, %c224_274] : memref<18x288xf32, #tpu.memory_space<vmem>>, vector<2x32xf32>
    tpu.vector_store %arg13[%c16_273, %c224_274], %167 {strides = array<i32>} : memref<18x288xf32, #tpu.memory_space<vmem>>, vector<2x32xf32>,
    %c96_275 = arith.constant 96 : index
    %c0_276 = arith.constant 0 : index
    %169 = vector.load %arg12[%c96_275, %c0_276] : memref<98x32xf32, #tpu.memory_space<vmem>>, vector<2x32xf32>
    %c16_277 = arith.constant 16 : index
    %c256_278 = arith.constant 256 : index
    %170 = vector.load %arg13[%c16_277, %c256_278] : memref<18x288xf32, #tpu.memory_space<vmem>>, vector<2x32xf32>
    tpu.vector_store %arg13[%c16_277, %c256_278], %169 {strides = array<i32>} : memref<18x288xf32, #tpu.memory_space<vmem>>, vector<2x32xf32>,
    %c0_279 = arith.constant 0 : index
    %c0_280 = arith.constant 0 : index
    %171 = vector.load %arg13[%c0_279, %c0_280] : memref<18x288xf32, #tpu.memory_space<vmem>>, vector<18x288xf32>
    %c0_281 = arith.constant 0 : index
    %c0_282 = arith.constant 0 : index
    %172 = vector.load %arg3[%c0_281, %c0_282] : memref<288x64xf32, #tpu.memory_space<vmem>>, vector<288x64xf32>
    %cst_283 = arith.constant dense<0.000000e+00> : vector<18x64xf32>
    %173 = tpu.matmul %171, %172, %cst_283 {dimension_numbers = #tpu.dot_dimension_numbers<[1], [0], [0], [1], [0, 0, 1, 1], [], []>} : vector<18x288xf32>, vector<288x64xf32>, vector<18x64xf32> -> vector<18x64xf32>
    %c0_284 = arith.constant 0 : index
    %c0_285 = arith.constant 0 : index
    %174 = vector.load %arg4[%c0_284, %c0_285] : memref<1x64xf32, #tpu.memory_space<vmem>>, vector<1x64xf32>
    %175 = vector.broadcast %174 : vector<1x64xf32> to vector<18x64xf32>
    %176 = arith.addf %173, %175 : vector<18x64xf32>
    %cst_286 = arith.constant 0.000000e+00 : f32
    %177 = vector.broadcast %cst_286 : f32 to vector<18x64xf32>
    %178 = arith.maximumf %176, %177 : vector<18x64xf32>
    %c0_287 = arith.constant 0 : index
    %c0_288 = arith.constant 0 : index
    %179 = vector.load %arg14[%c0_287, %c0_288] : memref<18x64xf32, #tpu.memory_space<vmem>>, vector<18x64xf32>
    tpu.vector_store %arg14[%c0_287, %c0_288], %178 {strides = array<i32>} : memref<18x64xf32, #tpu.memory_space<vmem>>, vector<18x64xf32>,
    %c0_289 = arith.constant 0 : index
    %c0_290 = arith.constant 0 : index
    %180 = vector.load %arg14[%c0_289, %c0_290] : memref<18x64xf32, #tpu.memory_space<vmem>>, vector<2x64xf32>
    %c0_291 = arith.constant 0 : index
    %c0_292 = arith.constant 0 : index
    %181 = vector.load %arg15[%c0_291, %c0_292] : memref<2x576xf32, #tpu.memory_space<vmem>>, vector<2x64xf32>
    tpu.vector_store %arg15[%c0_291, %c0_292], %180 {strides = array<i32>} : memref<2x576xf32, #tpu.memory_space<vmem>>, vector<2x64xf32>,
    %c2_293 = arith.constant 2 : index
    %c0_294 = arith.constant 0 : index
    %182 = vector.load %arg14[%c2_293, %c0_294] : memref<18x64xf32, #tpu.memory_space<vmem>>, vector<2x64xf32>
    %c0_295 = arith.constant 0 : index
    %c64_296 = arith.constant 64 : index
    %183 = vector.load %arg15[%c0_295, %c64_296] : memref<2x576xf32, #tpu.memory_space<vmem>>, vector<2x64xf32>
    tpu.vector_store %arg15[%c0_295, %c64_296], %182 {strides = array<i32>} : memref<2x576xf32, #tpu.memory_space<vmem>>, vector<2x64xf32>,
    %c4_297 = arith.constant 4 : index
    %c0_298 = arith.constant 0 : index
    %184 = vector.load %arg14[%c4_297, %c0_298] : memref<18x64xf32, #tpu.memory_space<vmem>>, vector<2x64xf32>
    %c0_299 = arith.constant 0 : index
    %c128_300 = arith.constant 128 : index
    %185 = vector.load %arg15[%c0_299, %c128_300] : memref<2x576xf32, #tpu.memory_space<vmem>>, vector<2x64xf32>
    tpu.vector_store %arg15[%c0_299, %c128_300], %184 {strides = array<i32>} : memref<2x576xf32, #tpu.memory_space<vmem>>, vector<2x64xf32>,
    %c6_301 = arith.constant 6 : index
    %c0_302 = arith.constant 0 : index
    %186 = vector.load %arg14[%c6_301, %c0_302] : memref<18x64xf32, #tpu.memory_space<vmem>>, vector<2x64xf32>
    %c0_303 = arith.constant 0 : index
    %c192_304 = arith.constant 192 : index
    %187 = vector.load %arg15[%c0_303, %c192_304] : memref<2x576xf32, #tpu.memory_space<vmem>>, vector<2x64xf32>
    tpu.vector_store %arg15[%c0_303, %c192_304], %186 {strides = array<i32>} : memref<2x576xf32, #tpu.memory_space<vmem>>, vector<2x64xf32>,
    %c8_305 = arith.constant 8 : index
    %c0_306 = arith.constant 0 : index
    %188 = vector.load %arg14[%c8_305, %c0_306] : memref<18x64xf32, #tpu.memory_space<vmem>>, vector<2x64xf32>
    %c0_307 = arith.constant 0 : index
    %c256_308 = arith.constant 256 : index
    %189 = vector.load %arg15[%c0_307, %c256_308] : memref<2x576xf32, #tpu.memory_space<vmem>>, vector<2x64xf32>
    tpu.vector_store %arg15[%c0_307, %c256_308], %188 {strides = array<i32>} : memref<2x576xf32, #tpu.memory_space<vmem>>, vector<2x64xf32>,
    %c10_309 = arith.constant 10 : index
    %c0_310 = arith.constant 0 : index
    %190 = vector.load %arg14[%c10_309, %c0_310] : memref<18x64xf32, #tpu.memory_space<vmem>>, vector<2x64xf32>
    %c0_311 = arith.constant 0 : index
    %c320 = arith.constant 320 : index
    %191 = vector.load %arg15[%c0_311, %c320] : memref<2x576xf32, #tpu.memory_space<vmem>>, vector<2x64xf32>
    tpu.vector_store %arg15[%c0_311, %c320], %190 {strides = array<i32>} : memref<2x576xf32, #tpu.memory_space<vmem>>, vector<2x64xf32>,
    %c12_312 = arith.constant 12 : index
    %c0_313 = arith.constant 0 : index
    %192 = vector.load %arg14[%c12_312, %c0_313] : memref<18x64xf32, #tpu.memory_space<vmem>>, vector<2x64xf32>
    %c0_314 = arith.constant 0 : index
    %c384 = arith.constant 384 : index
    %193 = vector.load %arg15[%c0_314, %c384] : memref<2x576xf32, #tpu.memory_space<vmem>>, vector<2x64xf32>
    tpu.vector_store %arg15[%c0_314, %c384], %192 {strides = array<i32>} : memref<2x576xf32, #tpu.memory_space<vmem>>, vector<2x64xf32>,
    %c14_315 = arith.constant 14 : index
    %c0_316 = arith.constant 0 : index
    %194 = vector.load %arg14[%c14_315, %c0_316] : memref<18x64xf32, #tpu.memory_space<vmem>>, vector<2x64xf32>
    %c0_317 = arith.constant 0 : index
    %c448 = arith.constant 448 : index
    %195 = vector.load %arg15[%c0_317, %c448] : memref<2x576xf32, #tpu.memory_space<vmem>>, vector<2x64xf32>
    tpu.vector_store %arg15[%c0_317, %c448], %194 {strides = array<i32>} : memref<2x576xf32, #tpu.memory_space<vmem>>, vector<2x64xf32>,
    %c16_318 = arith.constant 16 : index
    %c0_319 = arith.constant 0 : index
    %196 = vector.load %arg14[%c16_318, %c0_319] : memref<18x64xf32, #tpu.memory_space<vmem>>, vector<2x64xf32>
    %c0_320 = arith.constant 0 : index
    %c512 = arith.constant 512 : index
    %197 = vector.load %arg15[%c0_320, %c512] : memref<2x576xf32, #tpu.memory_space<vmem>>, vector<2x64xf32>
    tpu.vector_store %arg15[%c0_320, %c512], %196 {strides = array<i32>} : memref<2x576xf32, #tpu.memory_space<vmem>>, vector<2x64xf32>,
    %c0_321 = arith.constant 0 : index
    %c0_322 = arith.constant 0 : index
    %198 = vector.load %arg15[%c0_321, %c0_322] : memref<2x576xf32, #tpu.memory_space<vmem>>, vector<2x576xf32>
    %c0_323 = arith.constant 0 : index
    %c0_324 = arith.constant 0 : index
    %199 = vector.load %arg5[%c0_323, %c0_324] : memref<576x128xf32, #tpu.memory_space<vmem>>, vector<576x128xf32>
    %cst_325 = arith.constant dense<0.000000e+00> : vector<2x128xf32>
    %200 = tpu.matmul %198, %199, %cst_325 {dimension_numbers = #tpu.dot_dimension_numbers<[1], [0], [0], [1], [0, 0, 1, 1], [], []>} : vector<2x576xf32>, vector<576x128xf32>, vector<2x128xf32> -> vector<2x128xf32>
    %c0_326 = arith.constant 0 : index
    %c0_327 = arith.constant 0 : index
    %201 = vector.load %arg6[%c0_326, %c0_327] : memref<1x128xf32, #tpu.memory_space<vmem>>, vector<1x128xf32>
    %202 = vector.broadcast %201 : vector<1x128xf32> to vector<2x128xf32>
    %203 = arith.addf %200, %202 : vector<2x128xf32>
    %cst_328 = arith.constant 0.000000e+00 : f32
    %204 = vector.broadcast %cst_328 : f32 to vector<2x128xf32>
    %205 = arith.maximumf %203, %204 : vector<2x128xf32>
    %c0_329 = arith.constant 0 : index
    %c0_330 = arith.constant 0 : index
    %206 = vector.load %arg7[%c0_329, %c0_330] : memref<128x64xf32, #tpu.memory_space<vmem>>, vector<128x64xf32>
    %cst_331 = arith.constant dense<0.000000e+00> : vector<2x64xf32>
    %207 = tpu.matmul %205, %206, %cst_331 {dimension_numbers = #tpu.dot_dimension_numbers<[1], [0], [0], [1], [0, 0, 1, 1], [], []>} : vector<2x128xf32>, vector<128x64xf32>, vector<2x64xf32> -> vector<2x64xf32>
    %c0_332 = arith.constant 0 : index
    %c0_333 = arith.constant 0 : index
    %208 = vector.load %arg8[%c0_332, %c0_333] : memref<1x64xf32, #tpu.memory_space<vmem>>, vector<1x64xf32>
    %209 = vector.broadcast %208 : vector<1x64xf32> to vector<2x64xf32>
    %210 = arith.addf %207, %209 : vector<2x64xf32>
    %211 = math.tanh %210 : vector<2x64xf32>
    %c0_334 = arith.constant 0 : index
    %c0_335 = arith.constant 0 : index
    %212 = vector.load %arg9[%c0_334, %c0_335] : memref<64x10xf32, #tpu.memory_space<vmem>>, vector<64x10xf32>
    %cst_336 = arith.constant dense<0.000000e+00> : vector<2x10xf32>
    %213 = tpu.matmul %211, %212, %cst_336 {dimension_numbers = #tpu.dot_dimension_numbers<[1], [0], [0], [1], [0, 0, 1, 1], [], []>} : vector<2x64xf32>, vector<64x10xf32>, vector<2x10xf32> -> vector<2x10xf32>
    %c0_337 = arith.constant 0 : index
    %c0_338 = arith.constant 0 : index
    %214 = vector.load %arg10[%c0_337, %c0_338] : memref<1x10xf32, #tpu.memory_space<vmem>>, vector<1x10xf32>
    %215 = vector.broadcast %214 : vector<1x10xf32> to vector<2x10xf32>
    %216 = arith.addf %213, %215 : vector<2x10xf32>
    %c0_339 = arith.constant 0 : index
    %c0_340 = arith.constant 0 : index
    %217 = vector.load %arg11[%c0_339, %c0_340] : memref<2x10xf32, #tpu.memory_space<vmem>>, vector<2x10xf32>
    tpu.vector_store %arg11[%c0_339, %c0_340], %216 {strides = array<i32>} : memref<2x10xf32, #tpu.memory_space<vmem>>, vector<2x10xf32>,
    return
  }
}

</mosaic_0001>

<bundles_post_ra>
// kernel: locally_connected_nn_forward.1
= control target key start
LH: loop header
LB: loop body
LE: loop exit
PB: predicated region body
PF: predicated region fallthrough
CT: control target
= control target key end

     0   :  { %vm101_vm0 = vcmask 1040384   ;;  %v2082_v2 = vmov 0.0|0.0   ;;  %vm2083_vm1 = vmmov 1   ;;  %vm2084_vm3 = vmmov 0   ;;  %s2885_s0 = inlined_call_operand.vmem [shape: f32[98,9], index: 0, kind: input, shape index: {}]   ;;  %s2886_s1 = inlined_call_operand.vmem [shape: f32[9,32], index: 1, kind: input, shape index: {}]   ;;  %s2887_s2 = inlined_call_operand.vmem [shape: f32[1,32], index: 2, kind: input, shape index: {}]   ;;  %s2888_s3 = inlined_call_operand.vmem [shape: f32[288,64], index: 3, kind: input, shape index: {}]   ;;  %s2889_s4 = inlined_call_operand.vmem [shape: f32[1,64], index: 4, kind: input, shape index: {}]   ;;  %s2890_s5 = inlined_call_operand.vmem [shape: f32[576,128], index: 5, kind: input, shape index: {}]   ;;  %s2891_s6 = inlined_call_operand.vmem [shape: f32[1,128], index: 6, kind: input, shape index: {}]   ;;  %s2892_s7 = inlined_call_operand.vmem [shape: f32[128,64], index: 7, kind: input, shape index: {}]   ;;  %s2893_s8 = inlined_call_operand.vmem [shape: f32[1,64], index: 8, kind: input, shape index: {}]   ;;  %s2894_s9 = inlined_call_operand.vmem [shape: f32[64,10], index: 9, kind: input, shape index: {}]   ;;  %s2895_s10 = inlined_call_operand.vmem [shape: f32[1,10], index: 10, kind: input, shape index: {}]   ;;  %s2896_s11 = inlined_call_operand.hbm [shape: f32[2,10], index: 11, kind: output, shape index: {}]  }
   0x1   :  { %v52_v0 = vld [vmem:[%s2886_s1] sm:$0xff]  ;;  %v53_v1 = vld [vmem:[%s2886_s1 + $0x8] sm:$0x1]  ;;  %1890 = vmatprep.subr.bf16.mxu0 %v2082_v2  ;;  %2044 = vmatprep.subr.bf16.mxu1 %v2082_v2  ;;  %vm1892_vm2 = vmpackc.low %vm101_vm0, %vm2083_vm1  ;;  %v2085_v4 = vmov 0.0   ;;  %vm61_vm4 = vcmask 72704  }
   0x2   :  { %v1891_v3 = vpack.c.bf16 %v53_v1, %v52_v0  ;;  %1761 = vmatprep.mubr.msk.f32.mxu0 %vm2084_vm3, %v2085_v4  ;;  %1785 = vmatprep.mubr.msk.f32.mxu1 %vm2084_vm3, %v2085_v4  ;;  %v39_v5 = vld [vmem:[%s2885_s0] sm:$0xff] }
   0x3   :  { %v47_v6 = vld [vmem:[%s2885_s0 + $0x40] sm:$0xff] }
   0x4   :  { %1893 = vmatpush3.bf16.msk.msra.mxu0 %vm1892_vm2, %v1891_v3  ;;  %2045 = vmatpush3.bf16.msk.msra.mxu1 %vm1892_vm2, %v1891_v3 }
   0x5   :  { %16 = vsyncpa [#allocation7], 0  ;;  %v48_v7 = vld [vmem:[%s2885_s0 + $0x48] sm:$0xff]  ;;  %v49_v9 = vld [vmem:[%s2885_s0 + $0x50] sm:$0xff]  ;;  %vm248_vm5 = vcmask 261120   ;;  %vm261_vm6 = vcmask 254976  }
   0x6   :  { %v40_v8 = vld [vmem:[%s2885_s0 + $0x8] sm:$0xff]  ;;  %v41_v10 = vld [vmem:[%s2885_s0 + $0x10] sm:$0xff]  ;;  %v50_v11 = vld [vmem:[%s2885_s0 + $0x58] sm:$0xff]  ;;  %s2088_s28 = smov 96   ;;  %vm312_vm7 = vcmask 257026   ;;  %vm434_vm8 = vcmask 261126  }
   0x7   :  { %1762 = vmatmul.mubr.msk.f32.vlgmr.msra.gmra.mrb[0].mxu0 %vm61_vm4, %v39_v5  ;;  %1786 = vmatmul.mubr.msk.f32.vlgmr.msra.gmra.mrb[0].mxu1 %vm61_vm4, %v47_v6  ;;  %v42_v12 = vld [vmem:[%s2885_s0 + $0x18] sm:$0xff]  ;;  %v43_v13 = vld [vmem:[%s2885_s0 + $0x20] sm:$0xff]  ;;  %v44_v14 = vld [vmem:[%s2885_s0 + $0x28] sm:$0xff]  ;;  %vm373_vm9 = vcmask 259076   ;;  %vm270_vm10 = vcmask 517376   ;;  %vm277_vm11 = vcmask 779776  }
   0x8   :  { %1788 = vmatprep.mubr.msk.f32.mxu1 %vm2084_vm3, %v2085_v4  ;;  %1764 = vmatprep.mubr.msk.f32.mxu0 %vm2084_vm3, %v2085_v4  ;;  %v45_v15 = vld [vmem:[%s2885_s0 + $0x30] sm:$0xff]  ;;  %v46_v16 = vld [vmem:[%s2885_s0 + $0x38] sm:$0xff]  ;;  %v51_v17 = vld [vmem:[%s2885_s0 + $0x60] sm:$0x3]  ;;  %s2086_s0 = smov 32   ;;  %vm320_vm12 = vcmask 519426  }
   0x9   :  { %v2240_v18 = vld [vmem:[%s2887_s2] ss:$0 sm:$0xff]  ;;  %s2087_s2 = smov 64   ;;  %vm442_vm13 = vcmask 523526   ;;  %vm284_vm14 = vcmask 1042176   ;;  %vm381_vm15 = vcmask 521476  }
   0xa   :  { %vm328_vm0 = vcmask 781826   ;;  %vm336_vm1 = vcmask 1044226   ;;  %vm389_vm2 = vcmask 783876  }
   0xb   :  { %1789 = vmatmul.mubr.msk.f32.gmra.mrb[2].mxu1 %vm61_vm4, %v48_v7  ;;  %1765 = vmatmul.mubr.msk.f32.gmra.mrb[2].mxu0 %vm61_vm4, %v40_v8 }
   0xc   :  { %1791 = vmatprep.mubr.msk.f32.mxu1 %vm2084_vm3, %v2085_v4  ;;  %1767 = vmatprep.mubr.msk.f32.mxu0 %vm2084_vm3, %v2085_v4 }
   0xf   :  { %1792 = vmatmul.mubr.msk.f32.gmra.mrb[4].mxu1 %vm61_vm4, %v49_v9  ;;  %1768 = vmatmul.mubr.msk.f32.gmra.mrb[4].mxu0 %vm61_vm4, %v41_v10 }
  0x10   :  { %1794 = vmatprep.mubr.msk.f32.mxu1 %vm2084_vm3, %v2085_v4  ;;  %1770 = vmatprep.mubr.msk.f32.mxu0 %vm2084_vm3, %v2085_v4 }
  0x13   :  { %1795 = vmatmul.mubr.msk.f32.gmra.mrb[6].mxu1 %vm61_vm4, %v50_v11  ;;  %1771 = vmatmul.mubr.msk.f32.gmra.mrb[6].mxu0 %vm61_vm4, %v42_v12 }
  0x14   :  { %1773 = vmatprep.mubr.msk.f32.mxu0 %vm2084_vm3, %v2085_v4  ;;  %1797 = vmatprep.mubr.msk.f32.mxu1 %vm2084_vm3, %v2085_v4 }
  0x17   :  { %1774 = vmatmul.mubr.msk.f32.gmra.mrb[8].mxu0 %vm61_vm4, %v43_v13  ;;  %1798 = vmatmul.mubr.msk.f32.gmra.mrb[8].mxu1 %vm61_vm4, %v51_v17 }
  0x18   :  { %1776 = vmatprep.mubr.msk.f32.mxu0 %vm2084_vm3, %v2085_v4 }
  0x1b   :  { %1777 = vmatmul.mubr.msk.f32.gmra.mrb[10].mxu0 %vm61_vm4, %v44_v14 }
  0x1c   :  { %1779 = vmatprep.mubr.msk.f32.mxu0 %vm2084_vm3, %v2085_v4 }
  0x1f   :  { %1780 = vmatmul.mubr.msk.f32.gmra.mrb[12].mxu0 %vm61_vm4, %v45_v15 }
  0x20   :  { %1782 = vmatprep.mubr.msk.f32.mxu0 %vm2084_vm3, %v2085_v4 }
  0x23   :  { %1783 = vmatmul.mubr.msk.f32.gmra.mrb[14].mxu0 %vm61_vm4, %v46_v16  ;;  %vm397_vm4 = vcmask 1046276  }
  0xda   :  { %v171_v19 = vpop.f32.mrb[0].mxu0  ;;  %v211_v20 = vpop.f32.mrb[0].mxu1 }
  0xdb   :  { %v172_v21 = vadd.f32 %v2240_v18, %v171_v19  ;;  %v212_v22 = vadd.f32 %v2240_v18, %v211_v20  ;;  %v1763_v23 = vpop.f32.mrb[1].mxu0  ;;  %v1787_v24 = vpop.f32.mrb[1].mxu1 }
  0xdd   :  { %v235_v25 = vmax.f32 %v172_v21, 0.0  ;;  %v243_v26 = vmax.f32 %v212_v22, 0.0 }
  0xde   :  { %v216_v27 = vpop.f32.mrb[2].mxu1  ;;  %v176_v28 = vpop.f32.mrb[2].mxu0 }
  0xdf   :  { %249 = vst.msk [vmem:[#allocation2] sm:$0xff] %vm248_vm5, %v235_v25  ;;  %257 = vst.msk [vmem:[#allocation2 + $0x40] sm:$0xff] %vm248_vm5, %v243_v26  ;;  %v217_v29 = vadd.f32 %v2240_v18, %v216_v27  ;;  %v1790_v30 = vpop.f32.mrb[3].mxu1  ;;  %v177_v31 = vadd.f32 %v2240_v18, %v176_v28  ;;  %v1766_v32 = vpop.f32.mrb[3].mxu0 }
  0xe1   :  { %v244_v33 = vmax.f32 %v217_v29, 0.0  ;;  %v236_v34 = vmax.f32 %v177_v31, 0.0 }
  0xe2   :  { %v221_v35 = vpop.f32.mrb[4].mxu1  ;;  %v181_v36 = vpop.f32.mrb[4].mxu0 }
  0xe3   :  { %258 = vst.msk [vmem:[#allocation2 + $0x48] sm:$0xff] %vm248_vm5, %v244_v33  ;;  %v222_v37 = vadd.f32 %v2240_v18, %v221_v35  ;;  %250 = vst.msk [vmem:[#allocation2 + $0x8] sm:$0xff] %vm248_vm5, %v236_v34  ;;  %v1793_v38 = vpop.f32.mrb[5].mxu1  ;;  %v182_v39 = vadd.f32 %v2240_v18, %v181_v36  ;;  %v1769_v40 = vpop.f32.mrb[5].mxu0 }
  0xe5   :  { %v245_v41 = vmax.f32 %v222_v37, 0.0  ;;  %v237_v42 = vmax.f32 %v182_v39, 0.0 }
  0xe6   :  { %v531_v43 = vld [vmem:[#allocation2 + $0x40] sm:$0x3]  ;;  %v226_v44 = vpop.f32.mrb[6].mxu1  ;;  %v265_v45 = vld [vmem:[#allocation2 + $0x2] sm:$0x3]  ;;  %v186_v46 = vpop.f32.mrb[6].mxu0 }
  0xe7   :  { %259 = vst.msk [vmem:[#allocation2 + $0x50] sm:$0xff] %vm248_vm5, %v245_v41  ;;  %v227_v47 = vadd.f32 %v2240_v18, %v226_v44  ;;  %267 = vrot.lane.b32.xlu0 %v265_v45, %s2086_s0  ;;  %v571_v48 = vld [vmem:[#allocation2 + $0x40] sm:$0x3]  ;;  %251 = vst.msk [vmem:[#allocation2 + $0x10] sm:$0xff] %vm248_vm5, %v237_v42  ;;  %v187_v49 = vadd.f32 %v2240_v18, %v186_v46  ;;  %v578_v52 = vld [vmem:[#allocation2 + $0x42] sm:$0x3] }
  0xe8   :  { %532 = vst.msk [vmem:[#allocation3 + $0x28] sm:$0x3] %vm261_vm6, %v531_v43  ;;  %v573_v50 = vrot.slane %v571_v48, 6  ;;  %v272_v54 = vld [vmem:[#allocation2 + $0x4] sm:$0x3]  ;;  %v1772_v56 = vpop.f32.mrb[7].mxu0 }
  0xe9   :  { %v246_v51 = vmax.f32 %v227_v47, 0.0  ;;  %v238_v53 = vmax.f32 %v187_v49, 0.0  ;;  %v314_v55 = vld [vmem:[#allocation2 + $0x6] sm:$0x3]  ;;  %v580_v58 = vrot.slane %v578_v52, 6  ;;  %v1796_v60 = vpop.f32.mrb[7].mxu1 }
  0xea   :  { %574 = vrot.lane.b32.xlu1 %v573_v50, %s2087_s2  ;;  %v678_v57 = vld [vmem:[#allocation2 + $0x4e] sm:$0x3]  ;;  %v191_v59 = vpop.f32.mrb[8].mxu0  ;;  %v316_v61 = vrot.slane %v314_v55, 6  ;;  %v659_v1 = vld [vmem:[#allocation2 + $0x40] sm:$0x3] }
  0xeb   :  { %260 = vst.msk [vmem:[#allocation2 + $0x58] sm:$0xff] %vm248_vm5, %v246_v51  ;;  %274 = vrot.lane.b32.xlu0 %v272_v54, %s2087_s2  ;;  %252 = vst.msk [vmem:[#allocation2 + $0x18] sm:$0xff] %vm248_vm5, %v238_v53  ;;  %v192_v62 = vadd.f32 %v2240_v18, %v191_v59  ;;  %v1775_v63 = vpop.f32.mrb[9].mxu0  ;;  %v680_v0 = vrot.slane %v678_v57, 2  ;;  %v661_v8 = vrot.slane %v659_v1, 2 }
  0xec   :  { %v666_v9 = vld [vmem:[#allocation2 + $0x4a] sm:$0x3]  ;;  %v609_v10 = vld [vmem:[#allocation2 + $0x46] sm:$0x3]  ;;  %v279_v27 = vld [vmem:[#allocation2 + $0xe] sm:$0x3] }
  0xed   :  { %v239_v3 = vmax.f32 %v192_v62, 0.0  ;;  %v668_v16 = vrot.slane %v666_v9, 2  ;;  %v611_v17 = vrot.slane %v609_v10, 4  ;;  %v375_v29 = vld [vmem:[#allocation2 + $0xa] sm:$0x3] }
  0xee   :  { %581 = vrot.lane.b32.xlu1 %v580_v58, %s2088_s28  ;;  %v196_v5 = vpop.f32.mrb[10].mxu0  ;;  %v330_v13 = vld [vmem:[#allocation2 + $0x12] sm:$0x3]  ;;  %v628_v22 = vld [vmem:[#allocation2 + $0x54] sm:$0x3]  ;;  %v377_v30 = vrot.slane %v375_v29, 4 }
  0xef   :  { %317 = vrot.lane.b32.xlu0 %v316_v61, %s2086_s0  ;;  %v197_v6 = vadd.f32 %v2240_v18, %v196_v5  ;;  %v1778_v7 = vpop.f32.mrb[11].mxu0  ;;  %253 = vst.msk [vmem:[#allocation2 + $0x20] sm:$0xff] %vm248_vm5, %v239_v3  ;;  %v332_v20 = vrot.slane %v330_v13, 6  ;;  %v630_v28 = vrot.slane %v628_v22, 4  ;;  %v635_v31 = vld [vmem:[#allocation2 + $0x56] sm:$0x3] }
  0xf0   :  { %v322_v32 = vld [vmem:[#allocation2 + $0x8] sm:$0x3]  ;;  %v637_v33 = vrot.slane %v635_v31, 4  ;;  %v263_v34 = vld [vmem:[#allocation2] sm:$0x3] }
  0xf1   :  { %v240_v11 = vmax.f32 %v197_v6, 0.0  ;;  %v308_v35 = vld [vmem:[#allocation2 + $0x4] sm:$0x3]  ;;  %v324_v36 = vrot.slane %v322_v32, 6  ;;  %264 = vst.msk [vmem:[#allocation3] sm:$0x3] %vm261_vm6, %v263_v34 }
  0xf2   :  { %681 = vrot.lane.b32.xlu1 %v680_v0, %s2086_s0  ;;  %v201_v12 = vpop.f32.mrb[12].mxu0  ;;  %v310_v37 = vrot.slane %v308_v35, 6  ;;  %v585_v38 = vld [vmem:[#allocation2 + $0x44] sm:$0x3]  ;;  %v383_v39 = vld [vmem:[#allocation2 + $0xc] sm:$0x3] }
  0xf3   :  { %662 = vrot.lane.b32.xlu0 %v661_v8, %s2087_s2  ;;  %v202_v14 = vadd.f32 %v2240_v18, %v201_v12  ;;  %v1781_v15 = vpop.f32.mrb[13].mxu0  ;;  %254 = vst.msk [vmem:[#allocation2 + $0x28] sm:$0xff] %vm248_vm5, %v240_v11  ;;  %v294_v41 = vld [vmem:[#allocation2 + $0x1c] sm:$0x3]  ;;  %v621_v42 = vld [vmem:[#allocation2 + $0x4a] sm:$0x3] }
  0xf4   :  { %313 = vst.msk [vmem:[#allocation3] sm:$0xc] %vm312_vm7, %v310_v37  ;;  %v587_v43 = vrot.slane %v585_v38, 6  ;;  %v385_v44 = vrot.slane %v383_v39, 4  ;;  %v623_v47 = vrot.slane %v621_v42, 4 }
  0xf5   :  { %v241_v19 = vmax.f32 %v202_v14, 0.0  ;;  %v673_v49 = vld [vmem:[#allocation2 + $0x4c] sm:$0x3]  ;;  %v699_v50 = vld [vmem:[#allocation2 + $0x5c] sm:$0x3] }
  0xf6   :  { %669 = vrot.lane.b32.xlu1 %v668_v16, %s2088_s28  ;;  %v206_v21 = vpop.f32.mrb[14].mxu0  ;;  %v306_v25 = vld [vmem:[#allocation2 + $0x20] sm:$0x3]  ;;  %v364_v40 = vld [vmem:[#allocation2 + $0x24] sm:$0x3]  ;;  %v675_v53 = vrot.slane %v673_v49, 2 }
  0xf7   :  { %612 = vrot.lane.b32.xlu0 %v611_v17, %s2088_s28  ;;  %255 = vst.msk [vmem:[#allocation2 + $0x30] sm:$0xff] %vm248_vm5, %v241_v19  ;;  %v207_v23 = vadd.f32 %v2240_v18, %v206_v21  ;;  %v1784_v24 = vpop.f32.mrb[15].mxu0  ;;  %v366_v45 = vrot.slane %v364_v40, 6  ;;  %v300_v51 = vld [vmem:[#allocation2 + $0x1e] sm:$0x3]  ;;  %v701_v54 = vrot.slane %v699_v50, 2 }
  0xf8   :  { %307 = vst.msk [vmem:[#allocation3 + $0x10] sm:$0x3] %vm261_vm6, %v306_v25  ;;  %v404_v52 = vld [vmem:[#allocation2 + $0x1a] sm:$0x3]  ;;  %v369_v55 = vld [vmem:[#allocation2 + $0x8] sm:$0x3] }
  0xf9   :  { %v242_v26 = vmax.f32 %v207_v23, 0.0  ;;  %589 = vst.msk [vmem:[#allocation3 + $0x28] sm:$0xc] %vm312_vm7, %v587_v43  ;;  %368 = vst.msk [vmem:[#allocation3 + $0x10] sm:$0xc] %vm312_vm7, %v366_v45  ;;  %v371_v57 = vrot.slane %v369_v55, 4 }
  0xfa   :  { %333 = vrot.lane.b32.xlu1 %v332_v20, %s2088_s28  ;;  %v642_v56 = vld [vmem:[#allocation2 + $0x58] sm:$0x3]  ;;  %v425_v59 = vld [vmem:[#allocation2 + $0x28] sm:$0x3]  ;;  %677 = vst.msk [vmem:[#allocation3 + $0x20] sm:$0xc0] %vm434_vm8, %v675_v53 }
  0xfb   :  { %281 = vrot.lane.b32.xlu0 %v279_v27, %s2088_s28  ;;  %256 = vst.msk [vmem:[#allocation2 + $0x38] sm:$0xff] %vm248_vm5, %v242_v26  ;;  %v644_v58 = vrot.slane %v642_v56, 4  ;;  %v616_v60 = vld [vmem:[#allocation2 + $0x48] sm:$0x3]  ;;  %v685_v61 = vld [vmem:[#allocation2 + $0x58] sm:$0x3] }
  0xfc   :  { %703 = vst.msk [vmem:[#allocation3 + $0x28] sm:$0xc0] %vm434_vm8, %v701_v54  ;;  %v427_v62 = vrot.slane %v425_v59, 4  ;;  %v618_v63 = vrot.slane %v616_v60, 4  ;;  %v399_v0 = vld [vmem:[#allocation2 + $0x18] sm:$0x3] }
  0xfd   :  { %v286_v1 = vld [vmem:[#allocation2 + $0x10] sm:$0x3]  ;;  %374 = vst.msk [vmem:[#allocation3] sm:$0x30] %vm373_vm9, %v371_v57  ;;  %646 = vst.msk [vmem:[#allocation3 + $0x28] sm:$0x30] %vm373_vm9, %v644_v58 }
  0xfe   :  { %631 = vrot.lane.b32.xlu1 %v630_v28, %s2087_s2  ;;  %v401_v3 = vrot.slane %v399_v0, 4  ;;  %287 = vst.msk [vmem:[#allocation3 + $0x8] sm:$0x3] %vm261_vm6, %v286_v1  ;;  %v724_v5 = vld [vmem:[#allocation2 + $0x50] sm:$0x3]  ;;  %v406_v10 = vrot.slane %v404_v52, 4 }
  0xff   :  { %378 = vrot.lane.b32.xlu0 %v377_v30, %s2086_s0  ;;  %v338_v6 = vld [vmem:[#allocation2 + $0x14] sm:$0x3]  ;;  %429 = vst.msk [vmem:[#allocation3 + $0x10] sm:$0x30] %vm373_vm9, %v427_v62  ;;  %620 = vst.msk [vmem:[#allocation3 + $0x20] sm:$0x30] %vm373_vm9, %v618_v63 }
 0x100   :  { %725 = vst.msk [vmem:[#allocation3 + $0x38] sm:$0x3] %vm261_vm6, %v724_v5  ;;  %v340_v7 = vrot.slane %v338_v6, 6  ;;  %v430_v8 = vld [vmem:[#allocation2 + $0x1c] sm:$0x3]  ;;  %v687_v19 = vrot.slane %v685_v61, 2 }
 0x101   :  { %v491_v9 = vld [vmem:[#allocation2 + $0x20] sm:$0x3]  ;;  %403 = vst.msk [vmem:[#allocation3 + $0x8] sm:$0x30] %vm373_vm9, %v401_v3  ;;  %v432_v11 = vrot.slane %v430_v8, 2  ;;  %v773_v55 = vld [vmem:[%s2888_s3 + $0x90] sm:$0xff] }
 0x102   :  { %638 = vrot.lane.b32.xlu1 %v637_v33, %s2088_s28  ;;  %v486_v46 = vld [vmem:[#allocation2 + $0x3c] sm:$0x3]  ;;  %492 = vst.msk [vmem:[#allocation3 + $0x18] sm:$0x3] %vm261_vm6, %v491_v9  ;;  %v460_v12 = vld [vmem:[#allocation2 + $0x2c] sm:$0x3] }
 0x103   :  { %325 = vrot.lane.b32.xlu0 %v324_v36, %s2087_s2  ;;  %v488_v48 = vrot.slane %v486_v46, 2  ;;  %v533_v13 = vld [vmem:[#allocation2 + $0x24] sm:$0x3]  ;;  %v288_v14 = vld [vmem:[#allocation2 + $0x12] sm:$0x3]  ;;  %v462_v15 = vrot.slane %v460_v12, 2 }
 0x104   :  { %342 = vst.msk [vmem:[#allocation3 + $0x8] sm:$0xc] %vm312_vm7, %v340_v7  ;;  %v535_v16 = vrot.slane %v533_v13, 6  ;;  %v559_v17 = vld [vmem:[#allocation2 + $0x34] sm:$0x3]  ;;  %v771_v43 = vld [vmem:[%s2888_s3 + $0x80] sm:$0xff] }
 0x105   :  { %490 = vst.msk [vmem:[#allocation3 + $0x10] sm:$0xc0] %vm434_vm8, %v488_v48  ;;  %435 = vst.msk [vmem:[#allocation3] sm:$0xc0] %vm434_vm8, %v432_v11  ;;  %v561_v20 = vrot.slane %v559_v17, 6  ;;  %v756_v48 = vld [vmem:[%s2888_s3 + $0x8] sm:$0xff] }
 0x106   :  { %296 = vrot.lane.b32.xlu1 %v294_v41, %s2087_s2  ;;  %v511_v21 = vld [vmem:[#allocation2 + $0x30] sm:$0x3]  ;;  %v590_v22 = vld [vmem:[#allocation2 + $0x38] sm:$0x3]  ;;  %464 = vst.msk [vmem:[#allocation3 + $0x8] sm:$0xc0] %vm434_vm8, %v462_v15 }
 0x107   :  { %386 = vrot.lane.b32.xlu0 %v385_v44, %s2087_s2  ;;  %537 = vst.msk [vmem:[#allocation3 + $0x18] sm:$0xc] %vm312_vm7, %v535_v16  ;;  %v592_v23 = vrot.slane %v590_v22, 4  ;;  %v647_v24 = vld [vmem:[#allocation2 + $0x3c] sm:$0x3]  ;;  %v772_v44 = vld [vmem:[%s2888_s3 + $0x88] sm:$0xff] }
 0x108   :  { %512 = vst.msk [vmem:[#allocation3 + $0x20] sm:$0x3] %vm261_vm6, %v511_v21  ;;  %v704_v25 = vld [vmem:[#allocation2 + $0x40] sm:$0x3]  ;;  %v649_v26 = vrot.slane %v647_v24, 2  ;;  %v1894_v46 = vpack.c.bf16 %v772_v44, %v771_v43  ;;  %v774_v56 = vld [vmem:[%s2888_s3 + $0x98] sm:$0xff] }
 0x109   :  { %563 = vst.msk [vmem:[#allocation3 + $0x20] sm:$0xc] %vm312_vm7, %v561_v20  ;;  %v692_v27 = vld [vmem:[#allocation2 + $0x5a] sm:$0x3]  ;;  %v726_v28 = vld [vmem:[#allocation2 + $0x52] sm:$0x3]  ;;  %v1898_v58 = vpack.c.bf16 %v774_v56, %v773_v55 }
 0x10a   :  { %302 = vrot.lane.b32.xlu1 %v300_v51, %s2088_s28  ;;  %705 = vst.msk [vmem:[#allocation3 + $0x30] sm:$0x3] %vm261_vm6, %v704_v25  ;;  %v343_v29 = vld [vmem:[#allocation2 + $0x16] sm:$0x3]  ;;  %v350_v30 = vld [vmem:[#allocation2 + $0x20] sm:$0x3]  ;;  %1895 = vmatprep.subr.bf16.mxu1 %v1894_v46 }
 0x10b   :  { %624 = vrot.lane.b32.xlu0 %v623_v47, %s2086_s0  ;;  %594 = vst.msk [vmem:[#allocation3 + $0x18] sm:$0x30] %vm373_vm9, %v592_v23  ;;  %v694_v31 = vrot.slane %v692_v27, 2  ;;  %v345_v32 = vrot.slane %v343_v29, 6  ;;  %v352_v33 = vrot.slane %v350_v30, 6  ;;  %v755_v47 = vld [vmem:[%s2888_s3] sm:$0xff] }
 0x10c   :  { %651 = vst.msk [vmem:[#allocation3 + $0x18] sm:$0xc0] %vm434_vm8, %v649_v26  ;;  %v391_v34 = vld [vmem:[#allocation2 + $0x16] sm:$0x3]  ;;  %v411_v36 = vld [vmem:[#allocation2 + $0x24] sm:$0x3]  ;;  %v1896_v50 = vpack.c.bf16 %v756_v48, %v755_v47 }
 0x10d   :  { %v393_v35 = vrot.slane %v391_v34, 4  ;;  %v436_v37 = vld [vmem:[#allocation2 + $0x1e] sm:$0x3]  ;;  %v413_v38 = vrot.slane %v411_v36, 4  ;;  %v357_v40 = vld [vmem:[#allocation2 + $0x22] sm:$0x3] }
 0x10e   :  { %407 = vrot.lane.b32.xlu1 %v406_v10, %s2086_s0  ;;  %v438_v39 = vrot.slane %v436_v37, 2  ;;  %v359_v41 = vrot.slane %v357_v40, 6  ;;  %v418_v42 = vld [vmem:[#allocation2 + $0x26] sm:$0x3]  ;;  %v493_v45 = vld [vmem:[#allocation2 + $0x22] sm:$0x3]  ;;  %1897 = vmatpush3.bf16.msra.mxu1 %v1896_v50 }
 0x10f   :  { %290 = vrot.lane.b32.xlu0 %v288_v14, %s2086_s0  ;;  %v465_v49 = vld [vmem:[#allocation2 + $0x2e] sm:$0x3]  ;;  %v420_v51 = vrot.slane %v418_v42, 4  ;;  %v499_v52 = vld [vmem:[#allocation2 + $0x24] sm:$0x3]  ;;  %v757_v57 = vld [vmem:[%s2888_s3 + $0x10] sm:$0xff]  ;;  %1899 = vmatprep.subr.bf16.mxu1 %v1898_v58 }
 0x110   :  { %v467_v53 = vrot.slane %v465_v49, 2  ;;  %v444_v54 = vld [vmem:[#allocation2 + $0x20] sm:$0x3]  ;;  %v758_v59 = vld [vmem:[%s2888_s3 + $0x18] sm:$0xff]  ;;  %v776_v61 = vld [vmem:[%s2888_s3 + $0xa8] sm:$0xff]  ;;  %v231_v58 = vpop.f32.mrb[8].mxu1 }
 0x111   :  { %v775_v60 = vld [vmem:[%s2888_s3 + $0xa0] sm:$0xff]  ;;  %v446_v62 = vrot.slane %v444_v54, 2  ;;  %v452_v63 = vld [vmem:[#allocation2 + $0x2a] sm:$0x3]  ;;  %v1900_v0 = vpack.c.bf16 %v758_v59, %v757_v57  ;;  %v564_v5 = vld [vmem:[#allocation2 + $0x36] sm:$0x3] }
 0x112   :  { %688 = vrot.lane.b32.xlu1 %v687_v19, %s2087_s2  ;;  %v1902_v1 = vpack.c.bf16 %v776_v61, %v775_v60  ;;  %v538_v3 = vld [vmem:[#allocation2 + $0x26] sm:$0x3]  ;;  %v760_v7 = vld [vmem:[%s2888_s3 + $0x28] sm:$0xff]  ;;  %v454_v8 = vrot.slane %v452_v63, 2  ;;  %v777_v10 = vld [vmem:[%s2888_s3 + $0xb0] sm:$0xff]  ;;  %v566_v14 = vrot.slane %v564_v5, 6  ;;  %v232_v60 = vadd.f32 %v2240_v18, %v231_v58 }
 0x113   :  { %728 = vrot.lane.b32.xlu0 %v726_v28, %s2086_s0  ;;  %1901 = vmatpush3.bf16.msra.mxu1 %v1900_v0  ;;  %v759_v6 = vld [vmem:[%s2888_s3 + $0x20] sm:$0xff]  ;;  %v778_v11 = vld [vmem:[%s2888_s3 + $0xb8] sm:$0xff]  ;;  %v540_v12 = vrot.slane %v538_v3, 6  ;;  %v761_v15 = vld [vmem:[%s2888_s3 + $0x30] sm:$0xff]  ;;  %v1799_v61 = vpop.f32.mrb[9].mxu1  ;;  %vm458_vm7 = vcmask 1048326  }
 0x114   :  { %1903 = vmatprep.subr.bf16.mxu1 %v1902_v1  ;;  %v1904_v9 = vpack.c.bf16 %v760_v7, %v759_v6  ;;  %v1906_v13 = vpack.c.bf16 %v778_v11, %v777_v10  ;;  %v762_v16 = vld [vmem:[%s2888_s3 + $0x38] sm:$0xff]  ;;  %v505_v17 = vld [vmem:[#allocation2 + $0x2e] sm:$0x3]  ;;  %v552_v20 = vld [vmem:[#allocation2 + $0x32] sm:$0x3]  ;;  %v247_v0 = vmax.f32 %v232_v60, 0.0 }
 0x115   :  { %v1908_v19 = vpack.c.bf16 %v762_v16, %v761_v15  ;;  %v779_v21 = vld [vmem:[%s2888_s3 + $0xc0] sm:$0xff]  ;;  %v780_v22 = vld [vmem:[%s2888_s3 + $0xc8] sm:$0xff]  ;;  %v554_v28 = vrot.slane %v552_v20, 6  ;;  %v781_v30 = vld [vmem:[%s2888_s3 + $0xd0] sm:$0xff]  ;;  %vm973_vm8 = vcmask 517120   ;;  %vm989_vm9 = vcmask 1041920  }
 0x116   :  { %695 = vrot.lane.b32.xlu1 %v694_v31, %s2088_s28  ;;  %v545_v23 = vld [vmem:[#allocation2 + $0x28] sm:$0x3]  ;;  %v1910_v24 = vpack.c.bf16 %v780_v22, %v779_v21  ;;  %v763_v25 = vld [vmem:[%s2888_s3 + $0x40] sm:$0xff]  ;;  %v782_v31 = vld [vmem:[%s2888_s3 + $0xd8] sm:$0xff]  ;;  %262 = vst.msk [vmem:[#allocation2 + $0x60] sm:$0x3] %vm261_vm6, %v247_v0 }
 0x117   :  { %346 = vrot.lane.b32.xlu0 %v345_v32, %s2086_s0  ;;  %1905 = vmatpush3.bf16.msra.mxu1 %v1904_v9  ;;  %v764_v26 = vld [vmem:[%s2888_s3 + $0x48] sm:$0xff]  ;;  %v547_v29 = vrot.slane %v545_v23, 6  ;;  %v1914_v32 = vpack.c.bf16 %v782_v31, %v781_v30  ;;  %v766_v34 = vld [vmem:[%s2888_s3 + $0x58] sm:$0xff]  ;;  %v783_v37 = vld [vmem:[%s2888_s3 + $0xe0] sm:$0xff] }
 0x118   :  { %1907 = vmatprep.subr.bf16.mxu1 %v1906_v13  ;;  %v1912_v27 = vpack.c.bf16 %v764_v26, %v763_v25  ;;  %v767_v42 = vld [vmem:[%s2888_s3 + $0x60] sm:$0xff]  ;;  %v768_v43 = vld [vmem:[%s2888_s3 + $0x68] sm:$0xff]  ;;  %v472_v44 = vld [vmem:[#allocation2 + $0x38] sm:$0x3] }
 0x119   :  { %v785_v46 = vld [vmem:[%s2888_s3 + $0xf0] sm:$0xff]  ;;  %v786_v47 = vld [vmem:[%s2888_s3 + $0xf8] sm:$0xff]  ;;  %v706_v1 = vld [vmem:[#allocation2 + $0x42] sm:$0x3] }
 0x11a   :  { %353 = vrot.lane.b32.xlu1 %v352_v33, %s2087_s2  ;;  %v765_v33 = vld [vmem:[%s2888_s3 + $0x50] sm:$0xff]  ;;  %v732_v48 = vld [vmem:[#allocation2 + $0x5c] sm:$0x3]  ;;  %v595_v49 = vld [vmem:[#allocation2 + $0x3a] sm:$0x3]  ;;  %v1922_v50 = vpack.c.bf16 %v786_v47, %v785_v46 }
 0x11b   :  { %394 = vrot.lane.b32.xlu0 %v393_v35, %s2088_s28  ;;  %1909 = vmatpush3.bf16.msra.mxu1 %v1908_v19  ;;  %v519_v35 = vld [vmem:[#allocation2 + $0x3c] sm:$0x3]  ;;  %v1916_v36 = vpack.c.bf16 %v766_v34, %v765_v33  ;;  %v597_v55 = vrot.slane %v595_v49, 4  ;;  %v479_v56 = vld [vmem:[#allocation2 + $0x3a] sm:$0x3]  ;;  %v788_v60 = vld [vmem:[%s2888_s3 + $0x108] sm:$0xff] }
 0x11c   :  { %1911 = vmatprep.subr.bf16.mxu1 %v1910_v24  ;;  %v652_v57 = vld [vmem:[#allocation2 + $0x3e] sm:$0x3]  ;;  %v481_v59 = vrot.slane %v479_v56, 2  ;;  %v602_v63 = vld [vmem:[#allocation2 + $0x3c] sm:$0x3] }
 0x11d   :  { %v604_v3 = vrot.slane %v602_v63, 4  ;;  %v712_v5 = vld [vmem:[#allocation2 + $0x44] sm:$0x3]  ;;  %v738_v18 = vld [vmem:[#allocation2 + $0x5e] sm:$0x3] }
 0x11e   :  { %414 = vrot.lane.b32.xlu1 %v413_v38, %s2087_s2  ;;  %v784_v38 = vld [vmem:[%s2888_s3 + $0xe8] sm:$0xff]  ;;  %v744_v6 = vld [vmem:[#allocation2 + $0x60] sm:$0x3] }
 0x11f   :  { %439 = vrot.lane.b32.xlu0 %v438_v39, %s2086_s0  ;;  %1913 = vmatpush3.bf16.msra.mxu1 %v1912_v27  ;;  %v513_v39 = vld [vmem:[#allocation2 + $0x32] sm:$0x3]  ;;  %v1918_v40 = vpack.c.bf16 %v784_v38, %v783_v37  ;;  %745 = vst.msk [vmem:[#allocation3 + $0x40] sm:$0x3] %vm261_vm6, %v744_v6  ;;  %v718_v7 = vld [vmem:[#allocation2 + $0x4e] sm:$0x3] }
 0x120   :  { %1915 = vmatprep.subr.bf16.mxu1 %v1914_v32  ;;  %vm450_vm6 = vcmask 785926  }
 0x122   :  { %360 = vrot.lane.b32.xlu1 %v359_v41, %s2088_s28  ;;  %v525_v41 = vld [vmem:[#allocation2 + $0x3e] sm:$0x3] }
 0x123   :  { %495 = vrot.lane.b32.xlu0 %v493_v45, %s2086_s0  ;;  %1917 = vmatpush3.bf16.msra.mxu1 %v1916_v36  ;;  %v1920_v45 = vpack.c.bf16 %v768_v43, %v767_v42 }
 0x124   :  { %1919 = vmatprep.subr.bf16.mxu1 %v1918_v40 }
 0x126   :  { %421 = vrot.lane.b32.xlu1 %v420_v51, %s2088_s28  ;;  %v769_v51 = vld [vmem:[%s2888_s3 + $0x70] sm:$0xff] }
 0x127   :  { %501 = vrot.lane.b32.xlu0 %v499_v52, %s2087_s2  ;;  %1921 = vmatpush3.bf16.msra.mxu1 %v1920_v45  ;;  %v770_v52 = vld [vmem:[%s2888_s3 + $0x78] sm:$0xff] }
 0x128   :  { %1923 = vmatprep.subr.bf16.mxu1 %v1922_v50  ;;  %v1924_v54 = vpack.c.bf16 %v770_v52, %v769_v51 }
 0x12a   :  { %468 = vrot.lane.b32.xlu1 %v467_v53, %s2086_s0  ;;  %v474_v53 = vrot.slane %v472_v44, 2 }
 0x12b   :  { %447 = vrot.lane.b32.xlu0 %v446_v62, %s2087_s2  ;;  %1925 = vmatpush3.bf16.msra.mxu1 %v1924_v54  ;;  %v654_v62 = vrot.slane %v652_v57, 2 }
 0x12c   :  { %1926 = vmatprep.subr.bf16.mxu1 %v2082_v2 }
 0x12e   :  { %455 = vrot.lane.b32.xlu1 %v454_v8, %s2088_s28 }
 0x12f   :  { %541 = vrot.lane.b32.xlu0 %v540_v12, %s2086_s0 }
 0x132   :  { %567 = vrot.lane.b32.xlu1 %v566_v14, %s2086_s0 }
 0x133   :  { %507 = vrot.lane.b32.xlu0 %v505_v17, %s2088_s28 }
 0x136   :  { %555 = vrot.lane.b32.xlu1 %v554_v28, %s2088_s28 }
 0x137   :  { %548 = vrot.lane.b32.xlu0 %v547_v29, %s2087_s2 }
 0x13a   :  { %521 = vrot.lane.b32.xlu1 %v519_v35, %s2087_s2 }
 0x13b   :  { %515 = vrot.lane.b32.xlu0 %v513_v39, %s2086_s0 }
 0x13e   :  { %527 = vrot.lane.b32.xlu1 %v525_v41, %s2088_s28 }
 0x13f   :  { %734 = vrot.lane.b32.xlu0 %v732_v48, %s2087_s2 }
 0x142   :  { %475 = vrot.lane.b32.xlu1 %v474_v53, %s2087_s2 }
 0x143   :  { %598 = vrot.lane.b32.xlu0 %v597_v55, %s2086_s0 }
 0x146   :  { %482 = vrot.lane.b32.xlu1 %v481_v59, %s2088_s28  ;;  %v787_v59 = vld [vmem:[%s2888_s3 + $0x100] sm:$0xff] }
 0x147   :  { %655 = vrot.lane.b32.xlu0 %v654_v62, %s2086_s0  ;;  %v1927_v62 = vpack.c.bf16 %v788_v60, %v787_v59 }
 0x14a   :  { %708 = vrot.lane.b32.xlu1 %v706_v1, %s2086_s0 }
 0x14b   :  { %605 = vrot.lane.b32.xlu0 %v604_v3, %s2087_s2 }
 0x14e   :  { %714 = vrot.lane.b32.xlu1 %v712_v5, %s2087_s2  ;;  %v789_v5 = vld [vmem:[%s2888_s3 + $0x110] sm:$0xff] }
 0x14f   :  { %740 = vrot.lane.b32.xlu0 %v738_v18, %s2088_s28  ;;  %v790_v18 = vld [vmem:[%s2888_s3 + $0x118] sm:$0xff] }
 0x152   :  { %720 = vrot.lane.b32.xlu1 %v718_v7, %s2088_s28 }
 0x159   :  { %v268_v8 = vpop.permute.xlu0 %267 }
 0x15a   :  { %271 = vst.msk [vmem:[#allocation3] sm:$0x3] %vm270_vm10, %v268_v8  ;;  %v1930_v8 = vpack.c.bf16 %v790_v18, %v789_v5  ;;  %v1575_v18 = vld [vmem:[%s2889_s4] ss:$0 sm:$0xff] }
 0x15c   :  { %v2447_v9 = vpop.permute.xlu1 %574 }
 0x15d   :  { %v275_v10 = vpop.permute.xlu0 %274 }
 0x15e   :  { %278 = vst.msk [vmem:[#allocation3] sm:$0x3] %vm277_vm11, %v275_v10 }
 0x160   :  { %v2450_v11 = vpop.permute.xlu1 %581 }
 0x161   :  { %v318_v12 = vpop.permute.xlu0 %317 }
 0x162   :  { %321 = vst.msk [vmem:[#allocation3] sm:$0xc] %vm320_vm12, %v318_v12  ;;  %v748_v12 = vld [vmem:[#allocation3 + $0x10] sm:$0xff] }
 0x164   :  { %v682_v13 = vpop.permute.xlu1 %681 }
 0x165   :  { %684 = vst.msk [vmem:[#allocation3 + $0x20] sm:$0xc0] %vm442_vm13, %v682_v13  ;;  %v2454_v14 = vpop.permute.xlu0 %662  ;;  %v751_v13 = vld [vmem:[#allocation3 + $0x28] sm:$0xff] }
 0x168   :  { %v2456_v15 = vpop.permute.xlu1 %669 }
 0x169   :  { %v2458_v16 = vpop.permute.xlu0 %612 }
 0x16c   :  { %v334_v17 = vpop.permute.xlu1 %333 }
 0x16d   :  { %v282_v19 = vpop.permute.xlu0 %281 }
 0x16e   :  { %285 = vst.msk [vmem:[#allocation3] sm:$0x3] %vm284_vm14, %v282_v19 }
 0x170   :  { %v632_v20 = vpop.permute.xlu1 %631 }
 0x171   :  { %v379_v21 = vpop.permute.xlu0 %378 }
 0x172   :  { %382 = vst.msk [vmem:[#allocation3] sm:$0x30] %vm381_vm15, %v379_v21  ;;  %v1088_v21 = vld [vmem:[%s2890_s5 + $0x180] sm:$0xff] }
 0x174   :  { %v639_v22 = vpop.permute.xlu1 %638 }
 0x175   :  { %v326_v23 = vpop.permute.xlu0 %325 }
 0x176   :  { %329 = vst.msk [vmem:[#allocation3] sm:$0xc] %vm328_vm0, %v326_v23 }
 0x177   :  { %337 = vst.msk [vmem:[#allocation3] sm:$0xc] %vm336_vm1, %v334_v17  ;;  %v1040_v17 = vld [vmem:[%s2890_s5] sm:$0xff] }
 0x178   :  { %v297_v24 = vpop.permute.xlu1 %296 }
 0x179   :  { %v387_v25 = vpop.permute.xlu0 %386 }
 0x17a   :  { %390 = vst.msk [vmem:[#allocation3] sm:$0x30] %vm389_vm2, %v387_v25  ;;  %v1058_v25 = vld [vmem:[%s2890_s5 + $0x90] sm:$0xff] }
 0x17c   :  { %v303_v26 = vpop.permute.xlu1 %302 }
 0x17d   :  { %v625_v27 = vpop.permute.xlu0 %624 }
 0x17e   :  { %627 = vst.msk [vmem:[#allocation3 + $0x20] sm:$0x30] %vm381_vm15, %v625_v27  ;;  %v1072_v27 = vld [vmem:[%s2890_s5 + $0x100] sm:$0xff] }
 0x17f   :  { %634 = vst.msk [vmem:[#allocation3 + $0x20] sm:$0x30] %vm389_vm2, %v632_v20  ;;  %v1041_v20 = vld [vmem:[%s2890_s5 + $0x8] sm:$0xff] }
 0x180   :  { %v408_v28 = vpop.permute.xlu1 %407  ;;  %641 = vst.msk [vmem:[#allocation3 + $0x20] sm:$0x30] %vm397_vm4, %v639_v22  ;;  %v1089_v22 = vld [vmem:[%s2890_s5 + $0x188] sm:$0xff]  ;;  %v1934_v23 = vpack.c.bf16 %v1041_v20, %v1040_v17  ;;  %v1048_v17 = vld [vmem:[%s2890_s5 + $0x40] sm:$0xff] }
 0x181   :  { %410 = vst.msk [vmem:[#allocation3 + $0x8] sm:$0x30] %vm381_vm15, %v408_v28  ;;  %v291_v29 = vpop.permute.xlu0 %290 }
 0x182   :  { %293 = vst.msk [vmem:[#allocation3 + $0x8] sm:$0x3] %vm270_vm10, %v291_v29  ;;  %v1073_v29 = vld [vmem:[%s2890_s5 + $0x108] sm:$0xff] }
 0x183   :  { %299 = vst.msk [vmem:[#allocation3 + $0x8] sm:$0x3] %vm277_vm11, %v297_v24  ;;  %v1964_v24 = vpack.c.bf16 %v1089_v22, %v1088_v21 }
 0x184   :  { %305 = vst.msk [vmem:[#allocation3 + $0x8] sm:$0x3] %vm284_vm14, %v303_v26  ;;  %v689_v30 = vpop.permute.xlu1 %688  ;;  %v1059_v26 = vld [vmem:[%s2890_s5 + $0x98] sm:$0xff] }
 0x185   :  { %691 = vst.msk [vmem:[#allocation3 + $0x20] sm:$0xc0] %vm450_vm6, %v689_v30  ;;  %v729_v31 = vpop.permute.xlu0 %728  ;;  %v1936_v28 = vpack.c.bf16 %v1059_v26, %v1058_v25  ;;  %v1042_v30 = vld [vmem:[%s2890_s5 + $0x10] sm:$0xff]  ;;  %v1097_v25 = vld [vmem:[%s2890_s5 + $0x1c8] sm:$0xff] }
 0x186   :  { %731 = vst.msk [vmem:[#allocation3 + $0x38] sm:$0x3] %vm270_vm10, %v729_v31  ;;  %v1043_v31 = vld [vmem:[%s2890_s5 + $0x18] sm:$0xff] }
 0x188   :  { %v696_v32 = vpop.permute.xlu1 %695 }
 0x189   :  { %698 = vst.msk [vmem:[#allocation3 + $0x20] sm:$0xc0] %vm458_vm7, %v696_v32  ;;  %v347_v33 = vpop.permute.xlu0 %346  ;;  %v1966_v32 = vpack.c.bf16 %v1073_v29, %v1072_v27 }
 0x18a   :  { %349 = vst.msk [vmem:[#allocation3 + $0x8] sm:$0xc] %vm320_vm12, %v347_v33  ;;  %v1938_v33 = vpack.c.bf16 %v1043_v31, %v1042_v30  ;;  %v1066_v30 = vld [vmem:[%s2890_s5 + $0xd0] sm:$0xff]  ;;  %v1067_v31 = vld [vmem:[%s2890_s5 + $0xd8] sm:$0xff] }
 0x18c   :  { %v354_v34 = vpop.permute.xlu1 %353 }
 0x18d   :  { %356 = vst.msk [vmem:[#allocation3 + $0x8] sm:$0xc] %vm328_vm0, %v354_v34  ;;  %v395_v35 = vpop.permute.xlu0 %394  ;;  %v1090_v34 = vld [vmem:[%s2890_s5 + $0x190] sm:$0xff] }
 0x18e   :  { %398 = vst.msk [vmem:[#allocation3] sm:$0x30] %vm397_vm4, %v395_v35  ;;  %v1091_v35 = vld [vmem:[%s2890_s5 + $0x198] sm:$0xff] }
 0x190   :  { %v415_v36 = vpop.permute.xlu1 %414 }
 0x191   :  { %417 = vst.msk [vmem:[#allocation3 + $0x8] sm:$0x30] %vm389_vm2, %v415_v36  ;;  %v440_v37 = vpop.permute.xlu0 %439  ;;  %v1060_v36 = vld [vmem:[%s2890_s5 + $0xa0] sm:$0xff] }
 0x192   :  { %443 = vst.msk [vmem:[#allocation3] sm:$0xc0] %vm442_vm13, %v440_v37  ;;  %v1968_v37 = vpack.c.bf16 %v1091_v35, %v1090_v34  ;;  %v1081_v34 = vld [vmem:[%s2890_s5 + $0x148] sm:$0xff]  ;;  %v1050_v35 = vld [vmem:[%s2890_s5 + $0x50] sm:$0xff] }
 0x194   :  { %v361_v38 = vpop.permute.xlu1 %360 }
 0x195   :  { %363 = vst.msk [vmem:[#allocation3 + $0x8] sm:$0xc] %vm336_vm1, %v361_v38  ;;  %v496_v39 = vpop.permute.xlu0 %495  ;;  %v1061_v38 = vld [vmem:[%s2890_s5 + $0xa8] sm:$0xff] }
 0x196   :  { %498 = vst.msk [vmem:[#allocation3 + $0x18] sm:$0x3] %vm270_vm10, %v496_v39  ;;  %v1074_v39 = vld [vmem:[%s2890_s5 + $0x110] sm:$0xff] }
 0x198   :  { %v422_v40 = vpop.permute.xlu1 %421 }
 0x199   :  { %424 = vst.msk [vmem:[#allocation3 + $0x8] sm:$0x30] %vm397_vm4, %v422_v40  ;;  %v502_v41 = vpop.permute.xlu0 %501  ;;  %v1075_v40 = vld [vmem:[%s2890_s5 + $0x118] sm:$0xff] }
 0x19a   :  { %504 = vst.msk [vmem:[#allocation3 + $0x18] sm:$0x3] %vm277_vm11, %v502_v41  ;;  %v1940_v41 = vpack.c.bf16 %v1061_v38, %v1060_v36  ;;  %v1051_v36 = vld [vmem:[%s2890_s5 + $0x58] sm:$0xff] }
 0x19c   :  { %v469_v42 = vpop.permute.xlu1 %468 }
 0x19d   :  { %471 = vst.msk [vmem:[#allocation3 + $0x8] sm:$0xc0] %vm442_vm13, %v469_v42  ;;  %v448_v43 = vpop.permute.xlu0 %447  ;;  %v1970_v42 = vpack.c.bf16 %v1075_v40, %v1074_v39  ;;  %v1954_v40 = vpack.c.bf16 %v1051_v36, %v1050_v35 }
 0x19e   :  { %451 = vst.msk [vmem:[#allocation3] sm:$0xc0] %vm450_vm6, %v448_v43  ;;  %v1044_v43 = vld [vmem:[%s2890_s5 + $0x20] sm:$0xff] }
 0x1a0   :  { %v456_v44 = vpop.permute.xlu1 %455 }
 0x1a1   :  { %459 = vst.msk [vmem:[#allocation3] sm:$0xc0] %vm458_vm7, %v456_v44  ;;  %v542_v45 = vpop.permute.xlu0 %541  ;;  %v1045_v44 = vld [vmem:[%s2890_s5 + $0x28] sm:$0xff] }
 0x1a2   :  { %544 = vst.msk [vmem:[#allocation3 + $0x18] sm:$0xc] %vm320_vm12, %v542_v45  ;;  %v1092_v45 = vld [vmem:[%s2890_s5 + $0x1a0] sm:$0xff] }
 0x1a4   :  { %v568_v46 = vpop.permute.xlu1 %567 }
 0x1a5   :  { %570 = vst.msk [vmem:[#allocation3 + $0x20] sm:$0xc] %vm320_vm12, %v568_v46  ;;  %v508_v47 = vpop.permute.xlu0 %507  ;;  %v1093_v46 = vld [vmem:[%s2890_s5 + $0x1a8] sm:$0xff] }
 0x1a6   :  { %577 = vst.msk [vmem:[#allocation3 + $0x20] sm:$0xc] %vm328_vm0, %v2447_v9 }
 0x1a7   :  { %510 = vst.msk [vmem:[#allocation3 + $0x18] sm:$0x3] %vm284_vm14, %v508_v47  ;;  %v1062_v47 = vld [vmem:[%s2890_s5 + $0xb0] sm:$0xff] }
 0x1a8   :  { %584 = vst.msk [vmem:[#allocation3 + $0x20] sm:$0xc] %vm336_vm1, %v2450_v11  ;;  %v556_v48 = vpop.permute.xlu1 %555  ;;  %v746_v3 = vld [vmem:[#allocation3] sm:$0xff] }
 0x1a9   :  { %v549_v49 = vpop.permute.xlu0 %548 }
 0x1aa   :  { %551 = vst.msk [vmem:[#allocation3 + $0x18] sm:$0xc] %vm328_vm0, %v549_v49  ;;  %v1942_v49 = vpack.c.bf16 %v1045_v44, %v1044_v43  ;;  %v1068_v43 = vld [vmem:[%s2890_s5 + $0xe0] sm:$0xff] }
 0x1ab   :  { %558 = vst.msk [vmem:[#allocation3 + $0x18] sm:$0xc] %vm336_vm1, %v556_v48  ;;  %v1063_v48 = vld [vmem:[%s2890_s5 + $0xb8] sm:$0xff] }
 0x1ac   :  { %v522_v50 = vpop.permute.xlu1 %521 }
 0x1ad   :  { %v516_v51 = vpop.permute.xlu0 %515 }
 0x1ae   :  { %518 = vst.msk [vmem:[#allocation3 + $0x20] sm:$0x3] %vm270_vm10, %v516_v51  ;;  %v1076_v51 = vld [vmem:[%s2890_s5 + $0x120] sm:$0xff] }
 0x1af   :  { %524 = vst.msk [vmem:[#allocation3 + $0x20] sm:$0x3] %vm277_vm11, %v522_v50  ;;  %v1972_v50 = vpack.c.bf16 %v1093_v46, %v1092_v45  ;;  %v1069_v46 = vld [vmem:[%s2890_s5 + $0xe8] sm:$0xff] }
 0x1b0   :  { %v528_v52 = vpop.permute.xlu1 %527 }
 0x1b1   :  { %530 = vst.msk [vmem:[#allocation3 + $0x20] sm:$0x3] %vm284_vm14, %v528_v52  ;;  %v735_v53 = vpop.permute.xlu0 %734  ;;  %v1077_v52 = vld [vmem:[%s2890_s5 + $0x128] sm:$0xff] }
 0x1b2   :  { %737 = vst.msk [vmem:[#allocation3 + $0x38] sm:$0x3] %vm277_vm11, %v735_v53  ;;  %v1046_v53 = vld [vmem:[%s2890_s5 + $0x30] sm:$0xff] }
 0x1b4   :  { %v476_v54 = vpop.permute.xlu1 %475 }
 0x1b5   :  { %478 = vst.msk [vmem:[#allocation3 + $0x8] sm:$0xc0] %vm450_vm6, %v476_v54  ;;  %v599_v55 = vpop.permute.xlu0 %598  ;;  %v1944_v54 = vpack.c.bf16 %v1063_v48, %v1062_v47  ;;  %v1082_v47 = vld [vmem:[%s2890_s5 + $0x150] sm:$0xff]  ;;  %v1083_v48 = vld [vmem:[%s2890_s5 + $0x158] sm:$0xff] }
 0x1b6   :  { %601 = vst.msk [vmem:[#allocation3 + $0x18] sm:$0x30] %vm381_vm15, %v599_v55  ;;  %v1047_v55 = vld [vmem:[%s2890_s5 + $0x38] sm:$0xff] }
 0x1b7   :  { %v1946_v60 = vpack.c.bf16 %v1047_v55, %v1046_v53  ;;  %v1053_v53 = vld [vmem:[%s2890_s5 + $0x68] sm:$0xff]  ;;  %v1100_v55 = vld [vmem:[%s2890_s5 + $0x1e0] sm:$0xff] }
 0x1b8   :  { %v483_v56 = vpop.permute.xlu1 %482  ;;  %v750_v6 = vld [vmem:[#allocation3 + $0x20] sm:$0xff] }
 0x1b9   :  { %485 = vst.msk [vmem:[#allocation3 + $0x8] sm:$0xc0] %vm458_vm7, %v483_v56  ;;  %v656_v57 = vpop.permute.xlu0 %655  ;;  %v1094_v56 = vld [vmem:[%s2890_s5 + $0x1b0] sm:$0xff] }
 0x1ba   :  { %658 = vst.msk [vmem:[#allocation3 + $0x18] sm:$0xc0] %vm442_vm13, %v656_v57  ;;  %v1095_v57 = vld [vmem:[%s2890_s5 + $0x1b8] sm:$0xff] }
 0x1bb   :  { %665 = vst.msk [vmem:[#allocation3 + $0x18] sm:$0xc0] %vm450_vm6, %v2454_v14  ;;  %v754_v14 = vld [vmem:[#allocation3 + $0x40] sm:$0x3]  ;;  %v1976_v59 = vpack.c.bf16 %v1095_v57, %v1094_v56 }
 0x1bc   :  { %672 = vst.msk [vmem:[#allocation3 + $0x18] sm:$0xc0] %vm458_vm7, %v2456_v15  ;;  %v709_v58 = vpop.permute.xlu1 %708  ;;  %v1056_v15 = vld [vmem:[%s2890_s5 + $0x80] sm:$0xff]  ;;  %v1101_v57 = vld [vmem:[%s2890_s5 + $0x1e8] sm:$0xff] }
 0x1bd   :  { %711 = vst.msk [vmem:[#allocation3 + $0x30] sm:$0x3] %vm270_vm10, %v709_v58  ;;  %v606_v61 = vpop.permute.xlu0 %605  ;;  %v1974_v58 = vpack.c.bf16 %v1077_v52, %v1076_v51  ;;  %v1986_v51 = vpack.c.bf16 %v1083_v48, %v1082_v47  ;;  %v1052_v52 = vld [vmem:[%s2890_s5 + $0x60] sm:$0xff]  ;;  %v1110_v47 = vld [vmem:[%s2890_s5 + $0x230] sm:$0xff]  ;;  %v1111_v48 = vld [vmem:[%s2890_s5 + $0x238] sm:$0xff] }
 0x1be   :  { %608 = vst.msk [vmem:[#allocation3 + $0x18] sm:$0x30] %vm389_vm2, %v606_v61  ;;  %v1958_v56 = vpack.c.bf16 %v1053_v53, %v1052_v52  ;;  %v1364_v53 = vld [vmem:[%s2892_s7 + $0x10] sm:$0xff] }
 0x1bf   :  { %615 = vst.msk [vmem:[#allocation3 + $0x18] sm:$0x30] %vm397_vm4, %v2458_v16  ;;  %v1057_v16 = vld [vmem:[%s2890_s5 + $0x88] sm:$0xff] }
 0x1c0   :  { %v715_v63 = vpop.permute.xlu1 %714  ;;  %v747_v0 = vld [vmem:[#allocation3 + $0x8] sm:$0xff]  ;;  %v1932_v19 = vpack.c.bf16 %v1057_v16, %v1056_v15  ;;  %v1079_v16 = vld [vmem:[%s2890_s5 + $0x138] sm:$0xff] }
 0x1c1   :  { %717 = vst.msk [vmem:[#allocation3 + $0x30] sm:$0x3] %vm277_vm11, %v715_v63  ;;  %871 = vmatprep.mubr.f32.mxu1 %v747_v0  ;;  %v741_v1 = vpop.permute.xlu0 %740 }
 0x1c2   :  { %743 = vst.msk [vmem:[#allocation3 + $0x38] sm:$0x3] %vm284_vm14, %v741_v1  ;;  %872 = vmatmul.mubr.f32.vlgmr.msra.gmra.mrb[10].mxu1 %v746_v3  ;;  %1933 = vmatprep.subr.bf16.mxu0 %v1932_v19  ;;  %v1049_v19 = vld [vmem:[%s2890_s5 + $0x48] sm:$0xff] }
 0x1c3   :  { %876 = vmatprep.mubr.f32.mxu1 %v750_v6  ;;  %1928 = vmatpush3.bf16.msra.mxu1 %v1927_v62 }
 0x1c4   :  { %v721_v7 = vpop.permute.xlu1 %720  ;;  %1929 = vmatprep.subr.bf16.mxu1 %v2082_v2  ;;  %1935 = vmatpush3.bf16.msra.mxu0 %v1934_v23  ;;  %v1950_v23 = vpack.c.bf16 %v1049_v19, %v1048_v17  ;;  %v1086_v17 = vld [vmem:[%s2890_s5 + $0x170] sm:$0xff]  ;;  %v1087_v19 = vld [vmem:[%s2890_s5 + $0x178] sm:$0xff] }
 0x1c5   :  { %723 = vst.msk [vmem:[#allocation3 + $0x30] sm:$0x3] %vm284_vm14, %v721_v7  ;;  %1937 = vmatprep.subr.bf16.mxu0 %v1936_v28 }
 0x1c6   :  { %v749_v9 = vld [vmem:[#allocation3 + $0x18] sm:$0xff] }
 0x1c7   :  { %877 = vmatmul.mubr.f32.gmra.mrb[12].mxu1 %v749_v9 }
 0x1c8   :  { %1931 = vmatpush3.bf16.msra.mxu1 %v1930_v8  ;;  %1939 = vmatpush3.bf16.msra.mxu0 %v1938_v33  ;;  %v1952_v33 = vpack.c.bf16 %v1067_v31, %v1066_v30 }
 0x1c9   :  { %v753_v10 = vld [vmem:[#allocation3 + $0x38] sm:$0x3]  ;;  %1965 = vmatprep.subr.bf16.mxu1 %v1964_v24  ;;  %1941 = vmatprep.subr.bf16.mxu0 %v1940_v41  ;;  %v1098_v41 = vld [vmem:[%s2890_s5 + $0x1d0] sm:$0xff] }
 0x1ca   :  { %881 = vmatprep.mubr.f32.mxu1 %v753_v10  ;;  %v1096_v24 = vld [vmem:[%s2890_s5 + $0x1c0] sm:$0xff] }
 0x1cb   :  { %v1980_v27 = vpack.c.bf16 %v1097_v25, %v1096_v24  ;;  %v2089_v24 = vmov 1983009808  }
 0x1cc   :  { %v752_v11 = vld [vmem:[#allocation3 + $0x30] sm:$0x3]  ;;  %1943 = vmatpush3.bf16.msra.mxu0 %v1942_v49  ;;  %v1123_v25 = vunpack.c.l.s4 %v2089_v24 }
 0x1cd   :  { %882 = vmatmul.mubr.f32.gmra.mrb[14].mxu1 %v752_v11  ;;  %1945 = vmatprep.subr.bf16.mxu0 %v1944_v54 }
 0x1ce   :  { %1808 = vmatprep.mubr.msk.f32.mxu1 %vm2084_vm3, %v2085_v4 }
 0x1d0   :  { %1947 = vmatpush3.bf16.msra.mxu0 %v1946_v60 }
 0x1d1   :  { %1809 = vmatmul.mubr.msk.f32.vlgmr.msra.gmra.mrb[16].mxu1 %vm248_vm5, %v748_v12  ;;  %v1064_v12 = vld [vmem:[%s2890_s5 + $0xc0] sm:$0xff] }
 0x1d2   :  { %1811 = vmatprep.mubr.msk.f32.mxu1 %vm2084_vm3, %v2085_v4  ;;  %1967 = vmatpush3.bf16.msra.mxu1 %v1966_v32  ;;  %v1080_v32 = vld [vmem:[%s2890_s5 + $0x140] sm:$0xff] }
 0x1d3   :  { %1969 = vmatprep.subr.bf16.mxu1 %v1968_v37  ;;  %v1982_v39 = vpack.c.bf16 %v1081_v34, %v1080_v32  ;;  %v1105_v34 = vld [vmem:[%s2890_s5 + $0x208] sm:$0xff] }
 0x1d5   :  { %1812 = vmatmul.mubr.msk.f32.gmra.mrb[18].mxu1 %vm248_vm5, %v751_v13  ;;  %v1065_v13 = vld [vmem:[%s2890_s5 + $0xc8] sm:$0xff] }
 0x1d6   :  { %1814 = vmatprep.mubr.msk.f32.mxu1 %vm2084_vm3, %v2085_v4  ;;  %1971 = vmatpush3.bf16.msra.mxu1 %v1970_v42  ;;  %v1948_v15 = vpack.c.bf16 %v1065_v13, %v1064_v12  ;;  %v1099_v42 = vld [vmem:[%s2890_s5 + $0x1d8] sm:$0xff] }
 0x1d7   :  { %1973 = vmatprep.subr.bf16.mxu1 %v1972_v50  ;;  %v1984_v45 = vpack.c.bf16 %v1099_v42, %v1098_v41  ;;  %v1956_v50 = vpack.c.bf16 %v1069_v46, %v1068_v43  ;;  %v1107_v41 = vld [vmem:[%s2890_s5 + $0x218] sm:$0xff] }
 0x1d8   :  { %1949 = vmatprep.subr.bf16.mxu0 %v1948_v15 }
 0x1d9   :  { %1815 = vmatmul.mubr.msk.f32.gmra.mrb[20].mxu1 %vm248_vm5, %v754_v14  ;;  %v1078_v14 = vld [vmem:[%s2890_s5 + $0x130] sm:$0xff]  ;;  %vm970_vm5 = vcmask 523264   ;;  %1951 = vmatpush3.bf16.msra.mxu0 %v1950_v23 }
 0x1da   :  { %1975 = vmatpush3.bf16.msra.mxu1 %v1974_v58  ;;  %v1978_v22 = vpack.c.bf16 %v1079_v16, %v1078_v14  ;;  %1953 = vmatprep.subr.bf16.mxu0 %v1952_v33  ;;  %v1070_v58 = vld [vmem:[%s2890_s5 + $0xf0] sm:$0xff]  ;;  %v1104_v33 = vld [vmem:[%s2890_s5 + $0x200] sm:$0xff] }
 0x1db   :  { %1977 = vmatprep.subr.bf16.mxu1 %v1976_v59  ;;  %v1071_v59 = vld [vmem:[%s2890_s5 + $0xf8] sm:$0xff] }
 0x1dd   :  { %1955 = vmatpush3.bf16.msra.mxu0 %v1954_v40  ;;  %v1106_v40 = vld [vmem:[%s2890_s5 + $0x210] sm:$0xff] }
 0x1de   :  { %1979 = vmatpush3.bf16.msra.mxu1 %v1978_v22  ;;  %1957 = vmatprep.subr.bf16.mxu0 %v1956_v50  ;;  %v2000_v43 = vpack.c.bf16 %v1107_v41, %v1106_v40  ;;  %v1362_v50 = vld [vmem:[%s2892_s7] sm:$0xff] }
 0x1df   :  { %1981 = vmatprep.subr.bf16.mxu1 %v1980_v27 }
 0x1e1   :  { %1959 = vmatpush3.bf16.msra.mxu0 %v1958_v56 }
 0x1e2   :  { %1983 = vmatpush3.bf16.msra.mxu1 %v1982_v39 }
 0x1e3   :  { %1985 = vmatprep.subr.bf16.mxu1 %v1984_v45  ;;  %v1109_v45 = vld [vmem:[%s2890_s5 + $0x228] sm:$0xff] }
 0x1e6   :  { %1987 = vmatpush3.bf16.msra.mxu1 %v1986_v51  ;;  %v1363_v51 = vld [vmem:[%s2892_s7 + $0x8] sm:$0xff] }
 0x1e7   :  { %v2009_v52 = vpack.c.bf16 %v1363_v51, %v1362_v50 }
 0x295   :  { %v1636_v61 = vpop.f32.mrb[10].mxu1 }
 0x296   :  { %v1637_v62 = vpop.f32.mrb[11].mxu1 }
 0x297   :  { %v1638_v63 = vadd.f32 %v1637_v62, %v1636_v61  ;;  %v1988_v61 = vpack.c.bf16 %v1101_v57, %v1100_v55  ;;  %v1960_v62 = vpack.c.bf16 %v1071_v59, %v1070_v58  ;;  %v1366_v57 = vld [vmem:[%s2892_s7 + $0x20] sm:$0xff]  ;;  %v1367_v58 = vld [vmem:[%s2892_s7 + $0x28] sm:$0xff] }
 0x298   :  { %v2015_v59 = vpack.c.bf16 %v1367_v58, %v1366_v57 }
 0x299   :  { %v874_v8 = vadd.f32 %v1638_v63, %v1575_v18  ;;  %v1084_v63 = vld [vmem:[%s2890_s5 + $0x160] sm:$0xff]  ;;  %1989 = vmatprep.subr.bf16.mxu1 %v1988_v61  ;;  %1961 = vmatprep.subr.bf16.mxu0 %v1960_v62 }
 0x29a   :  { %v1639_v0 = vpop.f32.mrb[12].mxu1  ;;  %v1370_v61 = vld [vmem:[%s2892_s7 + $0x40] sm:$0xff] }
 0x29b   :  { %v1640_v1 = vpop.f32.mrb[13].mxu1 }
 0x29c   :  { %v1641_v3 = vadd.f32 %v1640_v1, %v1639_v0  ;;  %v1085_v0 = vld [vmem:[%s2890_s5 + $0x168] sm:$0xff]  ;;  %v1054_v1 = vld [vmem:[%s2890_s5 + $0x70] sm:$0xff] }
 0x29e   :  { %v879_v21 = vadd.f32 %v1641_v3, %v1575_v18 }
 0x2a0   :  { %v1642_v5 = vpop.f32.mrb[14].mxu1 }
 0x2a1   :  { %v1643_v6 = vpop.f32.mrb[15].mxu1 }
 0x2a2   :  { %v1644_v7 = vadd.f32 %v1643_v6, %v1642_v5 }
 0x2a4   :  { %v953_v9 = vpop.f32.mrb[16].mxu1  ;;  %v884_v38 = vadd.f32 %v1644_v7, %v1575_v18  ;;  %v1990_v7 = vpack.c.bf16 %v1085_v0, %v1084_v63  ;;  %v1371_v63 = vld [vmem:[%s2892_s7 + $0x48] sm:$0xff] }
 0x2a5   :  { %v954_v10 = vadd.f32 %v953_v9, %v874_v8  ;;  %v1810_v11 = vpop.f32.mrb[17].mxu1  ;;  %v1055_v8 = vld [vmem:[%s2890_s5 + $0x78] sm:$0xff]  ;;  %v1102_v9 = vld [vmem:[%s2890_s5 + $0x1f0] sm:$0xff]  ;;  %v2021_v0 = vpack.c.bf16 %v1371_v63, %v1370_v61 }
 0x2a6   :  { %v1962_v11 = vpack.c.bf16 %v1055_v8, %v1054_v1  ;;  %1991 = vmatpush3.bf16.msra.mxu1 %v1990_v7  ;;  %v1372_v1 = vld [vmem:[%s2892_s7 + $0x50] sm:$0xff] }
 0x2a7   :  { %v967_v20 = vmax.f32 %v954_v10, 0.0  ;;  %v1103_v10 = vld [vmem:[%s2890_s5 + $0x1f8] sm:$0xff]  ;;  %v1376_v8 = vld [vmem:[%s2892_s7 + $0x70] sm:$0xff] }
 0x2a8   :  { %v958_v26 = vpop.f32.mrb[18].mxu1  ;;  %v1992_v12 = vpack.c.bf16 %v1103_v10, %v1102_v9  ;;  %1963 = vmatpush3.bf16.msra.mxu0 %v1962_v11  ;;  %v1377_v9 = vld [vmem:[%s2892_s7 + $0x78] sm:$0xff]  ;;  %v1456_v11 = vld [vmem:[%s2894_s9] sm:$0xff] }
 0x2a9   :  { %971 = vst.msk [vmem:[#allocation4] sm:$0xff] %vm970_vm5, %v967_v20  ;;  %v959_v28 = vadd.f32 %v958_v26, %v879_v21  ;;  %v1813_v29 = vpop.f32.mrb[19].mxu1  ;;  %v1994_v20 = vpack.c.bf16 %v1087_v19, %v1086_v17  ;;  %1996 = vmatprep.subr.bf16.mxu0 %v2082_v2  ;;  %v1125_v26 = vlaneseq  ;;  %v2030_v10 = vpack.c.bf16 %v1377_v9, %v1376_v8 }
 0x2aa   :  { %1993 = vmatprep.subr.bf16.mxu1 %v1992_v12  ;;  %v1124_v29 = vunpack.c.0.s8 %v1123_v25  ;;  %v1457_v12 = vld [vmem:[%s2894_s9 + $0x8] sm:$0xff] }
 0x2ab   :  { %v968_v37 = vmax.f32 %v959_v28, 0.0  ;;  %1995 = vmatpush3.bf16.msra.mxu1 %v1994_v20  ;;  %v1126_v30 = vshrl.u32 %v1125_v26, 7 }
 0x2ac   :  { %v963_v44 = vpop.f32.mrb[20].mxu1  ;;  %2032 = vmatprep.subr.bf16.mxu1 %v2082_v2 }
 0x2ad   :  { %972 = vst.msk [vmem:[#allocation4 + $0x8] sm:$0xff] %vm970_vm5, %v968_v37  ;;  %v964_v49 = vadd.f32 %v963_v44, %v884_v38  ;;  %v1816_v54 = vpop.f32.mrb[21].mxu1  ;;  %v1127_v31 = vsub.s32 %v1124_v29, %v1126_v30  ;;  %v1997_v38 = vpack.c.bf16 %v1105_v34, %v1104_v33  ;;  %v1108_v44 = vld [vmem:[%s2890_s5 + $0x220] sm:$0xff]  ;;  %v1459_v29 = vld [vmem:[%s2894_s9 + $0x18] sm:$0xff]  ;;  %v1462_v34 = vld [vmem:[%s2894_s9 + $0x30] sm:$0xff] }
 0x2ae   :  { %v2003_v46 = vpack.c.bf16 %v1109_v45, %v1108_v44  ;;  %v1365_v54 = vld [vmem:[%s2892_s7 + $0x18] sm:$0xff]  ;;  %v1460_v30 = vld [vmem:[%s2894_s9 + $0x20] sm:$0xff] }
 0x2af   :  { %v969_v60 = vmax.f32 %v964_v49, 0.0  ;;  %v2006_v49 = vpack.c.bf16 %v1111_v48, %v1110_v47  ;;  %v2012_v56 = vpack.c.bf16 %v1365_v54, %v1364_v53 }
 0x2b0   :  { %v1580_v3 = vld.sshfl [vmem:[#allocation4 + $0x6] sm:$0x3 pattern:$0x76325410]  ;;  %v991_v5 = vld [vmem:[#allocation4 + $0x4] sm:$0x3] }
 0x2b1   :  { %974 = vst.msk [vmem:[#allocation4 + $0x10] sm:$0x3] %vm973_vm8, %v969_v60  ;;  %1002 = vrot.lane.b32.xlu1 %v1580_v3, %s2087_s2  ;;  %v1579_v18 = vld.sshfl [vmem:[#allocation4 + $0x2] sm:$0x3 pattern:$0x76325410] }
 0x2b2   :  { %992 = vst.msk [vmem:[#allocation5 + $0x2] sm:$0x3] %vm973_vm8, %v991_v5  ;;  %v975_v6 = vld [vmem:[#allocation4] sm:$0x3]  ;;  %986 = vrot.lane.b32.xlu0 %v1579_v18, %s2087_s2  ;;  %v1369_v60 = vld [vmem:[%s2892_s7 + $0x38] sm:$0xff]  ;;  %v1374_v18 = vld [vmem:[%s2892_s7 + $0x60] sm:$0xff] }
 0x2b3   :  { %976 = vst.msk [vmem:[#allocation5] sm:$0x3] %vm973_vm8, %v975_v6  ;;  %v1373_v3 = vld [vmem:[%s2892_s7 + $0x58] sm:$0xff]  ;;  %v1375_v6 = vld [vmem:[%s2892_s7 + $0x68] sm:$0xff] }
 0x2b4   :  { %v1582_v13 = vld.sshfl [vmem:[#allocation4 + $0xe] sm:$0x3 pattern:$0x76325410]  ;;  %v1021_v14 = vld [vmem:[#allocation4 + $0xc] sm:$0x3]  ;;  %v2024_v5 = vpack.c.bf16 %v1373_v3, %v1372_v1  ;;  %v2027_v7 = vpack.c.bf16 %v1375_v6, %v1374_v18 }
 0x2b5   :  { %1032 = vrot.lane.b32.xlu1 %v1582_v13, %s2087_s2  ;;  %v1581_v15 = vld.sshfl [vmem:[#allocation4 + $0xa] sm:$0x3 pattern:$0x76325410]  ;;  %1022 = vst.msk [vmem:[#allocation5 + $0x6] sm:$0x3] %vm973_vm8, %v1021_v14  ;;  %v2033_v13 = vpack.c.bf16 %v1457_v12, %v1456_v11 }
 0x2b6   :  { %v1006_v16 = vld [vmem:[#allocation4 + $0x8] sm:$0x3]  ;;  %1017 = vrot.lane.b32.xlu0 %v1581_v15, %s2087_s2  ;;  %v1583_v15 = vld [vmem:[%s2891_s6] ss:$0 sm:$0xff] }
 0x2b7   :  { %1007 = vst.msk [vmem:[#allocation5 + $0x4] sm:$0x3] %vm973_vm8, %v1006_v16 }
 0x2b8   :  { %v1036_v21 = vld [vmem:[#allocation4 + $0x10] sm:$0x3] }
 0x2b9   :  { %1037 = vst.msk [vmem:[#allocation5 + $0x8] sm:$0x3] %vm973_vm8, %v1036_v21 }
 0x2c0   :  { %v1584_v55 = vld.sshfl [vmem:[#allocation5 + $0x8] sm:$0x3 pattern:$0x76325410] }
 0x323   :  { %v1003_v22 = vpop.permute.xlu1 %1002 }
 0x324   :  { %1005 = vst.msk [vmem:[#allocation5 + $0x2] sm:$0x3] %vm989_vm9, %v1003_v22  ;;  %v987_v23 = vpop.permute.xlu0 %986 }
 0x325   :  { %990 = vst.msk [vmem:[#allocation5] sm:$0x3] %vm989_vm9, %v987_v23 }
 0x327   :  { %v1033_v27 = vpop.permute.xlu1 %1032 }
 0x328   :  { %1035 = vst.msk [vmem:[#allocation5 + $0x6] sm:$0x3] %vm989_vm9, %v1033_v27  ;;  %v1018_v28 = vpop.permute.xlu0 %1017 }
 0x329   :  { %1020 = vst.msk [vmem:[#allocation5 + $0x4] sm:$0x3] %vm989_vm9, %v1018_v28  ;;  %v1458_v28 = vld [vmem:[%s2894_s9 + $0x10] sm:$0xff] }
 0x330   :  { %v1038_v32 = vld [vmem:[#allocation5] sm:$0xff] }
 0x331   :  { %v1128_v35 = vrot.slane %v1038_v32, %v1127_v31  ;;  %v1121_v36 = vcombine.high %v1038_v32, %v1038_v32  ;;  %v1461_v32 = vld [vmem:[%s2894_s9 + $0x28] sm:$0xff] }
 0x332   :  { %v2039_v33 = vpack.c.bf16 %v1461_v32, %v1460_v30 }
 0x333   :  { %v1136_v37 = vcombine.high %v1128_v35, %v1128_v35  ;;  %v1135_v39 = vrot.slane %v1121_v36, %v1127_v31  ;;  %v2036_v31 = vpack.c.bf16 %v1459_v29, %v1458_v28 }
 0x335   :  { %1215 = vmatprep.mubr.f32.mxu0 %v1136_v37  ;;  %v1137_v42 = vcombine.high %v1135_v39, %v1135_v39  ;;  %v1586_v37 = vld [vmem:[%s2893_s8] ss:$0 sm:$0xff] }
 0x336   :  { %1216 = vmatmul.mubr.f32.vlgmr.msra.gmra.mrb[16].mxu0 %v1128_v35  ;;  %v1463_v35 = vld [vmem:[%s2894_s9 + $0x38] sm:$0xff]  ;;  %s2090_s9 = smov [#allocation6]  }
 0x337   :  { %1998 = vmatpush3.bf16.msra.mxu0 %v1997_v38  ;;  %1285 = vmatprep.mubr.f32.mxu1 %v1137_v42  ;;  %v2042_v36 = vpack.c.bf16 %v1463_v35, %v1462_v34  ;;  %v1587_v42 = vld [vmem:[%s2895_s10] ss:$0 sm:$0xff]  ;;  %s1552_s14 = sshll.u32 %s2090_s9, 4  ;;  %s1553_s14 = int_to_ptr.vmem [resolvable:$true] %s1552_s14 }
 0x338   :  { %1286 = vmatmul.mubr.f32.vlgmr.msra.gmra.mrb[22].mxu1 %v1135_v39  ;;  %1999 = vmatprep.subr.bf16.mxu0 %v2082_v2  ;;  %s2058_s8 = scalar_lea.vmem %s1553_s14, 32  ;;  %p2063_p1 = scmp.lt.s32.totalorder %s1553_s14, %s1553_s14 }
 0x339   :  { %1833 = vmatprep.mubr.msk.f32.mxu0 %vm2084_vm3, %v2085_v4  ;;  %1887 = vmatprep.mubr.msk.f32.mxu1 %vm2084_vm3, %v2085_v4  ;;  %p2059_p0 = scmp.ne.s32.totalorder %s1553_s14, %s2058_s8  ;;  %p2064_p2 = scmp.lt.s32.totalorder %s2058_s8, %s2058_s8 }
 0x33a   :  { %2034 = vmatpush3.bf16.msra.mxu1 %v2033_v13 }
 0x33b   :  { %2001 = vmatpush3.bf16.msra.mxu0 %v2000_v43  ;;  %2035 = vmatprep.subr.bf16.mxu1 %v2082_v2  ;;  %p2065_p3 = por %p2064_p2, %p2063_p1 }
 0x33c   :  { %2002 = vmatprep.subr.bf16.mxu0 %v2082_v2 }
 0x33d   :  { %p2066_p4 = pnand %p2065_p3, %p2059_p0 }
 0x33e   :  { %2037 = vmatpush3.bf16.msra.mxu1 %v2036_v31 }
 0x33f   :  { %2004 = vmatpush3.bf16.msra.mxu0 %v2003_v46  ;;  %2038 = vmatprep.subr.bf16.mxu1 %v2082_v2 }
 0x340   :  { %2005 = vmatprep.subr.bf16.mxu0 %v2082_v2 }
 0x342   :  { %2040 = vmatpush3.bf16.msra.mxu1 %v2039_v33 }
 0x343   :  { %2007 = vmatpush3.bf16.msra.mxu0 %v2006_v49  ;;  %2041 = vmatprep.subr.bf16.mxu1 %v2082_v2 }
 0x344   :  { %2008 = vmatprep.subr.bf16.mxu0 %v2082_v2 }
 0x346   :  { %1834 = vmatmul.mubr.msk.f32.vlgmr.msra.gmra.mrb[18].mxu0 %vm970_vm5, %v1584_v55  ;;  %2043 = vmatpush3.bf16.msra.mxu1 %v2042_v36 }
 0x347   :  { %2010 = vmatpush3.bf16.msra.mxu0 %v2009_v52  ;;  %1868 = vmatprep.mubr.msk.f32.mxu0 %vm2084_vm3, %v2085_v4  ;;  %v1368_v4 = vld [vmem:[%s2892_s7 + $0x30] sm:$0xff]  ;;  %vm1544_vm3 = vcmask 74752  }
 0x348   :  { %2011 = vmatprep.subr.bf16.mxu0 %v2082_v2  ;;  %v2018_v62 = vpack.c.bf16 %v1369_v60, %v1368_v4 }
 0x34b   :  { %2013 = vmatpush3.bf16.msra.mxu0 %v2012_v56 }
 0x34c   :  { %2014 = vmatprep.subr.bf16.mxu0 %v2082_v2 }
 0x34f   :  { %2016 = vmatpush3.bf16.msra.mxu0 %v2015_v59 }
 0x350   :  { %2017 = vmatprep.subr.bf16.mxu0 %v2082_v2 }
 0x353   :  { %2019 = vmatpush3.bf16.msra.mxu0 %v2018_v62 }
 0x354   :  { %2020 = vmatprep.subr.bf16.mxu0 %v2082_v2 }
 0x357   :  { %2022 = vmatpush3.bf16.msra.mxu0 %v2021_v0 }
 0x358   :  { %2023 = vmatprep.subr.bf16.mxu0 %v2082_v2 }
 0x35b   :  { %2025 = vmatpush3.bf16.msra.mxu0 %v2024_v5 }
 0x35c   :  { %2026 = vmatprep.subr.bf16.mxu0 %v2082_v2 }
 0x35f   :  { %2028 = vmatpush3.bf16.msra.mxu0 %v2027_v7 }
 0x360   :  { %2029 = vmatprep.subr.bf16.mxu0 %v2082_v2 }
 0x363   :  { %2031 = vmatpush3.bf16.msra.mxu0 %v2030_v10 }
 0x409   :  { %v1684_v14 = vpop.f32.mrb[16].mxu0 }
 0x40a   :  { %v1685_v16 = vpop.f32.mrb[17].mxu0 }
 0x40b   :  { %v1686_v17 = vadd.f32 %v1685_v16, %v1684_v14  ;;  %v1719_v19 = vpop.f32.mrb[22].mxu1 }
 0x40c   :  { %v1720_v20 = vpop.f32.mrb[23].mxu1 }
 0x40d   :  { %v1218_v21 = vadd.f32 %v1686_v17, %v1583_v15  ;;  %v1721_v22 = vadd.f32 %v1720_v20, %v1719_v19 }
 0x40f   :  { %v1288_v23 = vadd.f32 %v1721_v22, %v1218_v21 }
 0x419   :  { %v1357_v24 = vpop.f32.mrb[18].mxu0 }
 0x41a   :  { %v1358_v25 = vadd.f32 %v1357_v24, %v1288_v23  ;;  %v1835_v26 = vpop.f32.mrb[19].mxu0 }
 0x41c   :  { %v1361_v27 = vmax.f32 %v1358_v25, 0.0 }
 0x41e   :  { %1869 = vmatmul.mubr.f32.vlgmr.msra.gmra.mrb[20].mxu0 %v1361_v27 }
 0x4f1   :  { %v1451_v38 = vpop.f32.mrb[20].mxu0 }
 0x4f2   :  { %v1452_v39 = vadd.f32 %v1586_v37, %v1451_v38  ;;  %v1870_v40 = vpop.f32.mrb[21].mxu0 }
 0x4f4   :  { %2056 = vtanh.f32 %v1452_v39 }
 0x4fe   :  { %v2057_v41 = vpop.eup %2056 }
 0x4ff   :  { %1888 = vmatmul.mubr.msk.f32.vlgmr.msra.gmra.mrb[24].mxu1 %vm970_vm5, %v2057_v41 }
 0x5d2   :  { %v1540_v43 = vpop.f32.mrb[24].mxu1 }
 0x5d3   :  { %v1541_v2 = vadd.f32 %v1587_v42, %v1540_v43  ;;  %v1889_v44 = vpop.f32.mrb[25].mxu1 }
 0x5d5   :  { %1545 = vst.msk [vmem:[#allocation6] sm:$0x3] %vm1544_vm3, %v1541_v2 }
 0x5d6   :  { %2069 = shalt.err (!%p2066_p4)
}
 0x5d7   :  { %s2070_s0 = scalar_lea.hbm %s2896_s11, 32 }
 0x5d8   :  { %p2071_p5 = scmp.ne.s32.totalorder %s2896_s11, %s2070_s0  ;;  %p2074_p6 = scmp.lt.u32.totalorder %s2070_s0, %s2896_s11 }
 0x5da   :  { %p2076_p7 = pnand %p2074_p6, %p2071_p5 }
 0x5dc   :  { %2079 = shalt.err (!%p2076_p7)
}
 0x5dd   :  { %1555 = dma.vmem_to_hbm [thread:$0]  %s1553_s14, 32, %s2896_s11, [#allocation7]  }
 0x5de   :  { %2080 = dma.done.wait [#allocation7], 32  }
 0x5df   :  { %2081 = vsyncadd [#allocation7], 4294967264 }
 0x5e0   :  { %1559 = vsyncpa [#allocation7], 1 }

</bundles_post_ra>
